<compile_context>
chip_gen: v5e
topology: v5e:2x2
jax: 0.10.0
libtpu: 0.0.40
codegen_flags: <defaults>
</compile_context>

<pallas_src>
import functools

import jax
import jax.numpy as jnp
from jax.experimental import pallas as pl
from jax.experimental.pallas import tpu as pltpu


FP8_E4M3_MAX = 448.0                 # torch.finfo(torch.float8_e4m3fn).max
Q_MAX = FP8_E4M3_MAX - 10.0          # q_max used in ActQuantWrapper.forward
VMEM_LIMIT = 32 * 1024 * 1024        # safe on v5e/v6e/v7x


# ------------------------- bit-trick quant helpers -------------------------- #

def _fp8_e4m3_qdq(v, bitcast=pltpu.bitcast):
    """Emulated float8_e4m3fn quantize->dequantize (round-to-nearest-even).

    Valid for |v| <= ~448 (inputs are pre-clamped to +/-437), including the fp8
    subnormal range (exponent floored at -6, 3 mantissa bits -> quantum 2^(e-3)).
    Pure VPU work: integer exponent extraction + power-of-two reconstruction.
    """
    a = jnp.abs(v)
    e = jnp.right_shift(bitcast(a, jnp.int32), 23) - 127     # floor(log2 a); -127 at 0
    e = jnp.maximum(e, -6)                                   # e4m3 min normal exponent
    quantum = bitcast(jnp.left_shift(e + (127 - 3), 23), jnp.float32)   # 2**(e-3)
    inv_q = bitcast(jnp.left_shift((3 - e) + 127, 23), jnp.float32)     # 2**(3-e)
    return jnp.round(v * inv_q) * quantum


def _e2m2_qd(w, bitcast=pltpu.bitcast):
    """Inner quant of sym_quant_fpe2m2 / get_scale(bits=5, M=2, bias=0).

    w must already be clamped to [-14, 14].  log_scales = max(floor(log2|w|), 1),
    w_scale = 2**(log_scales - 2); returns round(w / w_scale) * w_scale.
    """
    a = jnp.abs(w)
    e = jnp.right_shift(bitcast(a, jnp.int32), 23) - 127     # floor(log2 a)
    ls = jnp.maximum(e, 1)                                   # torch clamp(min=1.0)
    w_scale = bitcast(jnp.left_shift(ls + (127 - 2), 23), jnp.float32)  # 2**(ls-2)
    inv_ws = bitcast(jnp.left_shift((2 - ls) + 127, 23), jnp.float32)   # 2**(2-ls)
    return jnp.round(w * inv_ws) * w_scale


# ----------------------------- kernels ------------------------------------- #

def _row_scale_kernel(x_ref, s_ref, inv_ref):
    """Per-token fp8 scale over the full K row (K-tiled reduce).

    Outputs: s = max(|x| over K, 1e-5)/Q_MAX (dequant scale, used in the matmul
    epilogue) and its EXACT reciprocal (one divide per row, used by the quantize
    pass so the big blocks never divide).
    """
    k = pl.program_id(1)

    @pl.when(k == 0)
    def _():
        s_ref[...] = jnp.zeros_like(s_ref)
        inv_ref[...] = jnp.zeros_like(inv_ref)

    s_ref[...] = jnp.maximum(
        s_ref[...], jnp.max(jnp.abs(x_ref[...]), axis=-1, keepdims=True))

    @pl.when(k == pl.num_programs(1) - 1)
    def _():
        amax = jnp.maximum(s_ref[...], 1e-5)
        s_ref[...] = amax / Q_MAX
        inv_ref[...] = Q_MAX / amax


def _quantize_kernel(x_ref, inv_ref, xq_ref):
    """Materialize un-scaled fp8-grid activations once, as bf16 (exact for e4m3)."""
    xs = jnp.clip(x_ref[...] * inv_ref[...], -(Q_MAX - 1.0), Q_MAX - 1.0)
    xq_ref[...] = _fp8_e4m3_qdq(xs).astype(xq_ref.dtype)


def _matmul_kernel(s_ref, xq_ref, wt_ref, b_ref, o_ref):
    """K/O-tiled matmul accumulating directly into the resident f32 output block.

    s_ref: (tm, 1) per-row dequant scale, xq_ref: (tm, tk) bf16 fp8-grid values,
    wt_ref: (tk, tn) bf16, b_ref: (1, tn) f32 -> o_ref: (tm, tn) f32.
    Per-row dequant scale + bias applied in the last-k epilogue.
    """
    k = pl.program_id(2)
    prod = jnp.dot(xq_ref[...], wt_ref[...], preferred_element_type=jnp.float32)

    @pl.when(k == 0)
    def _():
        o_ref[...] = prod

    @pl.when(k != 0)
    def _():
        o_ref[...] += prod

    @pl.when(k == pl.num_programs(2) - 1)
    def _():
        o_ref[...] = o_ref[...] * s_ref[...] + b_ref[...]


def _seq_absmax_kernel(y_ref, act_ref, inv_ref):
    """act_scales = clamp(max(|y| over seq), 1e-5) per (batch, feature); O- and S-tiled.

    Also emits the exact reciprocal (one divide per feature) for the later passes.
    """
    s = pl.program_id(2)

    @pl.when(s == 0)
    def _():
        act_ref[...] = jnp.zeros_like(act_ref)
        inv_ref[...] = jnp.zeros_like(inv_ref)

    act_ref[...] = jnp.maximum(
        act_ref[...], jnp.max(jnp.abs(y_ref[...]), axis=1, keepdims=True))

    @pl.when(s == pl.num_programs(2) - 1)
    def _():
        act = jnp.maximum(act_ref[...], 1e-5)
        act_ref[...] = act
        inv_ref[...] = 1.0 / act


def _row_amax_kernel(y_ref, inv_act_ref, sc_ref, inv_sc_ref):
    """Per-(batch, seq) abs-max of the normalized y over the feature axis (O-tiled).

    Finalize produces the E2M2 group scale (amax/14) and its exact reciprocal.
    """
    o = pl.program_id(2)

    @pl.when(o == 0)
    def _():
        sc_ref[...] = jnp.zeros_like(sc_ref)
        inv_sc_ref[...] = jnp.zeros_like(inv_sc_ref)

    yn = jnp.abs(y_ref[...] * inv_act_ref[...])
    sc_ref[...] = jnp.maximum(sc_ref[...], jnp.max(yn, axis=-1, keepdims=True))

    @pl.when(o == pl.num_programs(2) - 1)
    def _():
        amax = jnp.maximum(sc_ref[...], 1e-5)
        sc_ref[...] = amax / 14.0
        inv_sc_ref[...] = 14.0 / amax


def _out_apply_kernel(y_ref, inv_act_ref, act_ref, sc_ref, inv_sc_ref, o_ref):
    """Apply: y/act_scales -> sym_quant_fpe2m2 (groupsize=-1) -> *act_scales.

    All per-element divides replaced by multiplies with precomputed reciprocals;
    result written directly in the caller's dtype (no trailing cast pass).
    """
    yn = y_ref[...] * inv_act_ref[...]
    w = jnp.clip(yn * inv_sc_ref[...], -14.0, 14.0)
    w_sim = _e2m2_qd(w) * sc_ref[...]
    o_ref[...] = (w_sim * act_ref[...]).astype(o_ref.dtype)


# ----------------------------- wrapper ------------------------------------- #

def _round_up(a, b):
    return (a + b - 1) // b * b


def _pick_tile(dim, candidates, min_blocks=1):
    """Largest candidate dividing `dim`, preferring >= min_blocks blocks (megacore)."""
    for cand in candidates:
        if cand <= dim and dim % cand == 0 and dim // cand >= min_blocks:
            return cand
    for cand in candidates:
        if cand <= dim and dim % cand == 0:
            return cand
    return dim


def prepare_linear_weight(weight, bias):
    """Hoist the (O, K) -> (K, O) transpose + bf16 cast out of the per-call path."""
    return jnp.asarray(weight).T.astype(jnp.bfloat16), jnp.asarray(bias, jnp.float32)


def act_quant_wrapper_forward(x, wt_bf16, bias, *, in_bits=8, out_bits=8,
                              tm=512, tn=512, tk=1024):
    """x: (B, S, K), wt_bf16: (K, O) bf16 (pre-transposed), bias: (O,) f32.

    Returns (B, S, O) in x.dtype.
    """
    B, S, K = x.shape
    Kw, O = wt_bf16.shape
    assert Kw == K
    N = B * S
    x2d = x.reshape(N, K).astype(jnp.float32)

    # ---- tile selection / zero padding ----
    tm_ = tm if N >= tm else _round_up(N, 8)
    N_pad = _round_up(N, tm_)
    K_pad = _round_up(K, 128)                  # never fall back to a full-K tile
    O_pad = _round_up(O, 128)                  # lane-dense output stores
    tk_ = _pick_tile(K_pad, (tk, 1024, 512, 256, 128))
    tn_ = _pick_tile(O_pad, (tn, 512, 256, 128),
                     min_blocks=2 if O_pad >= 256 else 1)   # keep 2 blocks for 2 TCs

    if N_pad != N or K_pad != K:
        x2d = jnp.pad(x2d, ((0, N_pad - N), (0, K_pad - K)))
    wt = wt_bf16
    b2d = bias.astype(jnp.float32).reshape(1, O)
    if K_pad != K or O_pad != O:
        wt = jnp.pad(wt, ((0, K_pad - K), (0, O_pad - O)))
    if O_pad != O:
        b2d = jnp.pad(b2d, ((0, 0), (0, O_pad - O)))

    fake_quant_input = in_bits < 16

    if fake_quant_input:
        # ---- pass 1: per-token fp8 scale over the FULL K row (tiny outputs) ----
        row_scale, row_inv = pl.pallas_call(
            _row_scale_kernel,
            out_shape=(jax.ShapeDtypeStruct((N_pad, 1), jnp.float32),
                       jax.ShapeDtypeStruct((N_pad, 1), jnp.float32)),
            grid=(N_pad // tm_, K_pad // tk_),
            in_specs=[pl.BlockSpec((tm_, tk_), lambda i, k: (i, k))],
            out_specs=(pl.BlockSpec((tm_, 1), lambda i, k: (i, 0)),
                       pl.BlockSpec((tm_, 1), lambda i, k: (i, 0))),
            compiler_params=pltpu.CompilerParams(
                dimension_semantics=("parallel", "arbitrary"),
                vmem_limit_bytes=VMEM_LIMIT),
        )(x2d)

        # ---- pass 2: materialize fp8-grid activations ONCE, as bf16 ----
        xq = pl.pallas_call(
            _quantize_kernel,
            out_shape=jax.ShapeDtypeStruct((N_pad, K_pad), jnp.bfloat16),
            grid=(N_pad // tm_, K_pad // tk_),
            in_specs=[pl.BlockSpec((tm_, tk_), lambda i, k: (i, k)),
                      pl.BlockSpec((tm_, 1), lambda i, k: (i, 0))],
            out_specs=pl.BlockSpec((tm_, tk_), lambda i, k: (i, k)),
            compiler_params=pltpu.CompilerParams(
                dimension_semantics=("parallel", "parallel"),
                vmem_limit_bytes=VMEM_LIMIT),
        )(x2d, row_inv)
    else:
        row_scale = jnp.ones((N_pad, 1), jnp.float32)
        xq = x2d.astype(jnp.bfloat16)

    # ---- pass 3: tiled matmul, bf16 MXU feed, f32 accumulation in o_ref ----
    y2d = pl.pallas_call(
        _matmul_kernel,
        out_shape=jax.ShapeDtypeStruct((N_pad, O_pad), jnp.float32),
        grid=(N_pad // tm_, O_pad // tn_, K_pad // tk_),
        in_specs=[pl.BlockSpec((tm_, 1), lambda i, j, k: (i, 0)),
                  pl.BlockSpec((tm_, tk_), lambda i, j, k: (i, k)),
                  pl.BlockSpec((tk_, tn_), lambda i, j, k: (k, j)),
                  pl.BlockSpec((1, tn_), lambda i, j, k: (0, j))],
        out_specs=pl.BlockSpec((tm_, tn_), lambda i, j, k: (i, j)),
        compiler_params=pltpu.CompilerParams(
            dimension_semantics=("parallel", "parallel", "arbitrary"),
            vmem_limit_bytes=VMEM_LIMIT),
    )(row_scale, xq, wt, b2d)

    if out_bits >= 16:
        return y2d[:N, :O].reshape(B, S, O).astype(x.dtype)

    # Drop padded rows BEFORE the seq-axis reduce (they contain bias values); keep
    # padded O columns (exactly zero -> never a max, quantize back to zero, sliced
    # off at the end).  Keep this ordering invariant.
    y = y2d[:N].reshape(B, S, O_pad)
    ts = _pick_tile(S, (256, 128, 64, 32, 16, 8))
    to = _pick_tile(O_pad, (512, 256, 128))

    # ---- output fake-quant, pass 1: per-(batch, feature) abs-max over seq ----
    act_scales, inv_act = pl.pallas_call(
        _seq_absmax_kernel,
        out_shape=(jax.ShapeDtypeStruct((B, 1, O_pad), jnp.float32),
                   jax.ShapeDtypeStruct((B, 1, O_pad), jnp.float32)),
        grid=(B, O_pad // to, S // ts),
        in_specs=[pl.BlockSpec((1, ts, to), lambda b, o, s: (b, s, o))],
        out_specs=(pl.BlockSpec((1, 1, to), lambda b, o, s: (b, 0, o)),
                   pl.BlockSpec((1, 1, to), lambda b, o, s: (b, 0, o))),
        compiler_params=pltpu.CompilerParams(
            dimension_semantics=("parallel", "parallel", "arbitrary"),
            vmem_limit_bytes=VMEM_LIMIT),
    )(y)

    # ---- output fake-quant, pass 2: per-row abs-max of normalized y (O-tiled) ----
    row_sc, row_inv_sc = pl.pallas_call(
        _row_amax_kernel,
        out_shape=(jax.ShapeDtypeStruct((B, S, 1), jnp.float32),
                   jax.ShapeDtypeStruct((B, S, 1), jnp.float32)),
        grid=(B, S // ts, O_pad // to),
        in_specs=[pl.BlockSpec((1, ts, to), lambda b, s, o: (b, s, o)),
                  pl.BlockSpec((1, 1, to), lambda b, s, o: (b, 0, o))],
        out_specs=(pl.BlockSpec((1, ts, 1), lambda b, s, o: (b, s, 0)),
                   pl.BlockSpec((1, ts, 1), lambda b, s, o: (b, s, 0))),
        compiler_params=pltpu.CompilerParams(
            dimension_semantics=("parallel", "parallel", "arbitrary"),
            vmem_limit_bytes=VMEM_LIMIT),
    )(y, inv_act)

    # ---- output fake-quant, pass 3: normalize + E2M2 quant-dequant (O-tiled) ----
    out = pl.pallas_call(
        _out_apply_kernel,
        out_shape=jax.ShapeDtypeStruct((B, S, O_pad), x.dtype),
        grid=(B, S // ts, O_pad // to),
        in_specs=[pl.BlockSpec((1, ts, to), lambda b, s, o: (b, s, o)),
                  pl.BlockSpec((1, 1, to), lambda b, s, o: (b, 0, o)),
                  pl.BlockSpec((1, 1, to), lambda b, s, o: (b, 0, o)),
                  pl.BlockSpec((1, ts, 1), lambda b, s, o: (b, s, 0)),
                  pl.BlockSpec((1, ts, 1), lambda b, s, o: (b, s, 0))],
        out_specs=pl.BlockSpec((1, ts, to), lambda b, s, o: (b, s, o)),
        compiler_params=pltpu.CompilerParams(
            dimension_semantics=("parallel", "parallel", "parallel"),
            vmem_limit_bytes=VMEM_LIMIT),
    )(y, inv_act, act_scales, row_sc, row_inv_sc)

    if O_pad != O:
        out = out[:, :, :O]
    return out


# --------------------------- pure-JAX reference ----------------------------- #

def reference_forward(x, weight, bias, *, in_bits=8, out_bits=8):
    """Faithful (divide-based) emulation of ActQuantWrapper.forward, in JAX."""
    bc = jax.lax.bitcast_convert_type
    x = x.astype(jnp.float32)
    if in_bits < 16:
        scale = jnp.maximum(jnp.max(jnp.abs(x), axis=-1, keepdims=True), 1e-5) / Q_MAX
        xs = jnp.clip(x / scale, -(Q_MAX - 1.0), Q_MAX - 1.0)
        xq = _fp8_e4m3_qdq(xs, bitcast=bc)
    else:
        scale = jnp.ones(x.shape[:-1] + (1,), jnp.float32)
        xq = x
    y = jnp.einsum("bsk,ok->bso", xq.astype(jnp.bfloat16),
                   weight.astype(jnp.bfloat16),
                   preferred_element_type=jnp.float32) * scale + bias
    if out_bits < 16:
        act = jnp.maximum(jnp.max(jnp.abs(y), axis=1, keepdims=True), 1e-5)
        yn = y / act
        scales = jnp.maximum(jnp.max(jnp.abs(yn), axis=-1, keepdims=True), 1e-5) / 14.0
        w = jnp.clip(yn / scales, -14.0, 14.0)
        y = _e2m2_qd(w, bitcast=bc) * scales * act
    return y


if __name__ == "__main__":
    key = jax.random.PRNGKey(0)

    def run_case(B, S, K, O, in_bits, out_bits, tk=1024):
        k1, k2, k3 = jax.random.split(jax.random.fold_in(key, B * 10000 + K + O), 3)
        x = jax.random.normal(k1, (B, S, K), dtype=jnp.float32)
        weight = jax.random.normal(k2, (O, K), dtype=jnp.float32) / jnp.sqrt(K)
        bias = 0.1 * jax.random.normal(k3, (O,), dtype=jnp.float32)

        # Weight transpose + bf16 cast done ONCE, outside the per-call path.
        wt_bf16, bias_f32 = prepare_linear_weight(weight, bias)

        fwd = jax.jit(functools.partial(act_quant_wrapper_forward,
                                        in_bits=in_bits, out_bits=out_bits, tk=tk))
        out = jax.block_until_ready(fwd(x, wt_bf16, bias_f32))
        ref = jax.block_until_ready(reference_forward(x, weight, bias,
                                                      in_bits=in_bits,
                                                      out_bits=out_bits))
        assert out.shape == (B, S, O)
        assert bool(jnp.all(jnp.isfinite(out)))
        max_err = float(jnp.max(jnp.abs(out - ref)))
        assert bool(jnp.allclose(out, ref, rtol=2e-2, atol=2e-2)), max_err

    # single K tile, padded K & O (K=32 -> 128, O=64 -> 128)
    run_case(2, 8, 32, 64, in_bits=8, out_bits=8)
    # multi K / O tiles: exercises K-reduce accumulation and O-tiled output quant
    run_case(2, 16, 256, 320, in_bits=8, out_bits=8, tk=128)
    # quantizers disabled (torch defaults: bits == 16 -> plain Linear path)
    run_case(2, 8, 32, 64, in_bits=16, out_bits=16)

    print("KERNEL_OK")
</pallas_src>

<mosaic_0001>
module attributes {stable_mosaic.version = 11 : i64} {
  func.func @_row_scale_kernel(%arg0: i32, %arg1: i32, %arg2: memref<16x128xf32, #tpu.memory_space<vmem>>, %arg3: memref<16x1xf32, #tpu.memory_space<vmem>>, %arg4: memref<16x1xf32, #tpu.memory_space<vmem>>) attributes {dimension_semantics = [#tpu.dimension_semantics<parallel>, #tpu.dimension_semantics<arbitrary>], iteration_bounds = array<i64: 1, 1>, scalar_prefetch = 0 : i64, scratch_operands = 0 : i64, tpu.core_type = #tpu.core_type<tc>, window_params = [{transform_indices = @transform_0, window_bounds = array<i64: 16, 128>}, {transform_indices = @transform_1, window_bounds = array<i64: 16, 1>}, {transform_indices = @transform_2, window_bounds = array<i64: 16, 1>}]} {
    %c0_i32 = arith.constant 0 : i32
    %0 = arith.cmpi eq, %arg1, %c0_i32 : i32
    %1 = arith.extui %0 : i1 to i32
    %c0_i32_0 = arith.constant 0 : i32
    %2 = arith.cmpi ne, %1, %c0_i32_0 : i32
    scf.if %2 {
      %cst_8 = arith.constant 0.000000e+00 : f32
      %13 = vector.broadcast %cst_8 : f32 to vector<16x1xf32>
      %c0_9 = arith.constant 0 : index
      %c0_10 = arith.constant 0 : index
      %14 = vector.load %arg3[%c0_9, %c0_10] : memref<16x1xf32, #tpu.memory_space<vmem>>, vector<16x1xf32>
      tpu.vector_store %arg3[%c0_9, %c0_10], %13 {strides = array<i32>} : memref<16x1xf32, #tpu.memory_space<vmem>>, vector<16x1xf32>,
      %cst_11 = arith.constant 0.000000e+00 : f32
      %15 = vector.broadcast %cst_11 : f32 to vector<16x1xf32>
      %c0_12 = arith.constant 0 : index
      %c0_13 = arith.constant 0 : index
      %16 = vector.load %arg4[%c0_12, %c0_13] : memref<16x1xf32, #tpu.memory_space<vmem>>, vector<16x1xf32>
      tpu.vector_store %arg4[%c0_12, %c0_13], %15 {strides = array<i32>} : memref<16x1xf32, #tpu.memory_space<vmem>>, vector<16x1xf32>,
    } else {
    }
    %c0 = arith.constant 0 : index
    %c0_1 = arith.constant 0 : index
    %3 = vector.load %arg3[%c0, %c0_1] : memref<16x1xf32, #tpu.memory_space<vmem>>, vector<16x1xf32>
    %c0_2 = arith.constant 0 : index
    %c0_3 = arith.constant 0 : index
    %4 = vector.load %arg2[%c0_2, %c0_3] : memref<16x128xf32, #tpu.memory_space<vmem>>, vector<16x128xf32>
    %5 = math.absf %4 : vector<16x128xf32>
    %cst = arith.constant dense<0xFF800000> : vector<16xf32>
    %6 = vector.multi_reduction <maximumf>, %5, %cst [1] : vector<16x128xf32> to vector<16xf32>
    %7 = vector.shape_cast %6 : vector<16xf32> to vector<16x1xf32>
    %8 = arith.maximumf %3, %7 : vector<16x1xf32>
    %c0_4 = arith.constant 0 : index
    %c0_5 = arith.constant 0 : index
    %9 = vector.load %arg3[%c0_4, %c0_5] : memref<16x1xf32, #tpu.memory_space<vmem>>, vector<16x1xf32>
    tpu.vector_store %arg3[%c0_4, %c0_5], %8 {strides = array<i32>} : memref<16x1xf32, #tpu.memory_space<vmem>>, vector<16x1xf32>,
    %c0_i32_6 = arith.constant 0 : i32
    %10 = arith.cmpi eq, %arg1, %c0_i32_6 : i32
    %11 = arith.extui %10 : i1 to i32
    %c0_i32_7 = arith.constant 0 : i32
    %12 = arith.cmpi ne, %11, %c0_i32_7 : i32
    scf.if %12 {
      %c0_8 = arith.constant 0 : index
      %c0_9 = arith.constant 0 : index
      %13 = vector.load %arg3[%c0_8, %c0_9] : memref<16x1xf32, #tpu.memory_space<vmem>>, vector<16x1xf32>
      %cst_10 = arith.constant 9.99999974E-6 : f32
      %14 = vector.broadcast %cst_10 : f32 to vector<16x1xf32>
      %15 = arith.maximumf %13, %14 : vector<16x1xf32>
      %cst_11 = arith.constant 4.380000e+02 : f32
      %16 = vector.broadcast %cst_11 : f32 to vector<16x1xf32>
      %17 = arith.divf %15, %16 : vector<16x1xf32>
      %c0_12 = arith.constant 0 : index
      %c0_13 = arith.constant 0 : index
      %18 = vector.load %arg3[%c0_12, %c0_13] : memref<16x1xf32, #tpu.memory_space<vmem>>, vector<16x1xf32>
      tpu.vector_store %arg3[%c0_12, %c0_13], %17 {strides = array<i32>} : memref<16x1xf32, #tpu.memory_space<vmem>>, vector<16x1xf32>,
      %cst_14 = arith.constant 4.380000e+02 : f32
      %19 = vector.broadcast %cst_14 : f32 to vector<16x1xf32>
      %20 = arith.divf %19, %15 : vector<16x1xf32>
      %c0_15 = arith.constant 0 : index
      %c0_16 = arith.constant 0 : index
      %21 = vector.load %arg4[%c0_15, %c0_16] : memref<16x1xf32, #tpu.memory_space<vmem>>, vector<16x1xf32>
      tpu.vector_store %arg4[%c0_15, %c0_16], %20 {strides = array<i32>} : memref<16x1xf32, #tpu.memory_space<vmem>>, vector<16x1xf32>,
    } else {
    }
    return
  }
  func.func @transform_0(%arg0: i32, %arg1: i32) -> (i32, i32) {
    %c0_i32 = arith.constant 0 : i32
    return %arg0, %arg1 : i32, i32
  }
  func.func @transform_1(%arg0: i32, %arg1: i32) -> (i32, i32) {
    %c0_i32 = arith.constant 0 : i32
    %c0_i32_0 = arith.constant 0 : i32
    return %arg0, %c0_i32 : i32, i32
  }
  func.func @transform_2(%arg0: i32, %arg1: i32) -> (i32, i32) {
    %c0_i32 = arith.constant 0 : i32
    %c0_i32_0 = arith.constant 0 : i32
    return %arg0, %c0_i32 : i32, i32
  }
}

module attributes {stable_mosaic.version = 11 : i64} {
  func.func @_quantize_kernel(%arg0: i32, %arg1: i32, %arg2: memref<16x128xf32, #tpu.memory_space<vmem>>, %arg3: memref<16x1xf32, #tpu.memory_space<vmem>>, %arg4: memref<16x128xbf16, #tpu.memory_space<vmem>>) attributes {dimension_semantics = [#tpu.dimension_semantics<parallel>, #tpu.dimension_semantics<parallel>], iteration_bounds = array<i64: 1, 1>, scalar_prefetch = 0 : i64, scratch_operands = 0 : i64, tpu.core_type = #tpu.core_type<tc>, window_params = [{transform_indices = @transform_0, window_bounds = array<i64: 16, 128>}, {transform_indices = @transform_1, window_bounds = array<i64: 16, 1>}, {transform_indices = @transform_2, window_bounds = array<i64: 16, 128>}]} {
    %c0 = arith.constant 0 : index
    %c0_0 = arith.constant 0 : index
    %0 = vector.load %arg2[%c0, %c0_0] : memref<16x128xf32, #tpu.memory_space<vmem>>, vector<16x128xf32>
    %c0_1 = arith.constant 0 : index
    %c0_2 = arith.constant 0 : index
    %1 = vector.load %arg3[%c0_1, %c0_2] : memref<16x1xf32, #tpu.memory_space<vmem>>, vector<16x1xf32>
    %2 = vector.broadcast %1 : vector<16x1xf32> to vector<16x128xf32>
    %3 = arith.mulf %0, %2 : vector<16x128xf32>
    %cst = arith.constant -4.370000e+02 : f32
    %cst_3 = arith.constant 4.370000e+02 : f32
    %4 = vector.broadcast %cst : f32 to vector<16x128xf32>
    %5 = arith.maximumf %4, %3 : vector<16x128xf32>
    %6 = vector.broadcast %cst_3 : f32 to vector<16x128xf32>
    %7 = arith.minimumf %6, %5 : vector<16x128xf32>
    %8 = math.absf %7 : vector<16x128xf32>
    %9 = tpu.bitcast %8 : vector<16x128xf32> -> vector<16x128xi32>
    %c23_i32 = arith.constant 23 : i32
    %10 = vector.broadcast %c23_i32 : i32 to vector<16x128xi32>
    %11 = arith.shrsi %9, %10 : vector<16x128xi32>
    %c127_i32 = arith.constant 127 : i32
    %12 = vector.broadcast %c127_i32 : i32 to vector<16x128xi32>
    %13 = arith.subi %11, %12 : vector<16x128xi32>
    %c-6_i32 = arith.constant -6 : i32
    %14 = vector.broadcast %c-6_i32 : i32 to vector<16x128xi32>
    %15 = arith.maxsi %13, %14 : vector<16x128xi32>
    %c124_i32 = arith.constant 124 : i32
    %16 = vector.broadcast %c124_i32 : i32 to vector<16x128xi32>
    %17 = arith.addi %15, %16 : vector<16x128xi32>
    %c23_i32_4 = arith.constant 23 : i32
    %18 = vector.broadcast %c23_i32_4 : i32 to vector<16x128xi32>
    %19 = arith.shli %17, %18 : vector<16x128xi32>
    %20 = tpu.bitcast %19 : vector<16x128xi32> -> vector<16x128xf32>
    %c3_i32 = arith.constant 3 : i32
    %21 = vector.broadcast %c3_i32 : i32 to vector<16x128xi32>
    %22 = arith.subi %21, %15 : vector<16x128xi32>
    %c127_i32_5 = arith.constant 127 : i32
    %23 = vector.broadcast %c127_i32_5 : i32 to vector<16x128xi32>
    %24 = arith.addi %22, %23 : vector<16x128xi32>
    %c23_i32_6 = arith.constant 23 : i32
    %25 = vector.broadcast %c23_i32_6 : i32 to vector<16x128xi32>
    %26 = arith.shli %24, %25 : vector<16x128xi32>
    %27 = tpu.bitcast %26 : vector<16x128xi32> -> vector<16x128xf32>
    %28 = arith.mulf %7, %27 : vector<16x128xf32>
    %29 = math.roundeven %28 : vector<16x128xf32>
    %30 = arith.mulf %29, %20 : vector<16x128xf32>
    %31 = arith.truncf %30 : vector<16x128xf32> to vector<16x128xbf16>
    %c0_7 = arith.constant 0 : index
    %c0_8 = arith.constant 0 : index
    %32 = vector.load %arg4[%c0_7, %c0_8] : memref<16x128xbf16, #tpu.memory_space<vmem>>, vector<16x128xbf16>
    tpu.vector_store %arg4[%c0_7, %c0_8], %31 {strides = array<i32>} : memref<16x128xbf16, #tpu.memory_space<vmem>>, vector<16x128xbf16>,
    return
  }
  func.func @transform_0(%arg0: i32, %arg1: i32) -> (i32, i32) {
    %c0_i32 = arith.constant 0 : i32
    return %arg0, %arg1 : i32, i32
  }
  func.func @transform_1(%arg0: i32, %arg1: i32) -> (i32, i32) {
    %c0_i32 = arith.constant 0 : i32
    %c0_i32_0 = arith.constant 0 : i32
    return %arg0, %c0_i32 : i32, i32
  }
  func.func @transform_2(%arg0: i32, %arg1: i32) -> (i32, i32) {
    %c0_i32 = arith.constant 0 : i32
    return %arg0, %arg1 : i32, i32
  }
}

module attributes {stable_mosaic.version = 11 : i64} {
  func.func @_matmul_kernel(%arg0: i32, %arg1: i32, %arg2: i32, %arg3: memref<16x1xf32, #tpu.memory_space<vmem>>, %arg4: memref<16x128xbf16, #tpu.memory_space<vmem>>, %arg5: memref<128x128xbf16, #tpu.memory_space<vmem>>, %arg6: memref<1x128xf32, #tpu.memory_space<vmem>>, %arg7: memref<16x128xf32, #tpu.memory_space<vmem>>) attributes {dimension_semantics = [#tpu.dimension_semantics<parallel>, #tpu.dimension_semantics<parallel>, #tpu.dimension_semantics<arbitrary>], iteration_bounds = array<i64: 1, 1, 1>, scalar_prefetch = 0 : i64, scratch_operands = 0 : i64, tpu.core_type = #tpu.core_type<tc>, window_params = [{transform_indices = @transform_0, window_bounds = array<i64: 16, 1>}, {transform_indices = @transform_1, window_bounds = array<i64: 16, 128>}, {transform_indices = @transform_2, window_bounds = array<i64: 128, 128>}, {transform_indices = @transform_3, window_bounds = array<i64: 1, 128>}, {transform_indices = @transform_4, window_bounds = array<i64: 16, 128>}]} {
    %c0 = arith.constant 0 : index
    %c0_0 = arith.constant 0 : index
    %0 = vector.load %arg4[%c0, %c0_0] : memref<16x128xbf16, #tpu.memory_space<vmem>>, vector<16x128xbf16>
    %c0_1 = arith.constant 0 : index
    %c0_2 = arith.constant 0 : index
    %1 = vector.load %arg5[%c0_1, %c0_2] : memref<128x128xbf16, #tpu.memory_space<vmem>>, vector<128x128xbf16>
    %cst = arith.constant dense<0.000000e+00> : vector<16x128xf32>
    %2 = tpu.matmul %0, %1, %cst {dimension_numbers = #tpu.dot_dimension_numbers<[1], [0], [0], [1], [0, 0, 1, 1], [], []>} : vector<16x128xbf16>, vector<128x128xbf16>, vector<16x128xf32> -> vector<16x128xf32>
    %c0_i32 = arith.constant 0 : i32
    %3 = arith.cmpi eq, %arg2, %c0_i32 : i32
    %4 = arith.extui %3 : i1 to i32
    %c0_i32_3 = arith.constant 0 : i32
    %5 = arith.cmpi ne, %4, %c0_i32_3 : i32
    scf.if %5 {
      %c0_8 = arith.constant 0 : index
      %c0_9 = arith.constant 0 : index
      %12 = vector.load %arg7[%c0_8, %c0_9] : memref<16x128xf32, #tpu.memory_space<vmem>>, vector<16x128xf32>
      tpu.vector_store %arg7[%c0_8, %c0_9], %2 {strides = array<i32>} : memref<16x128xf32, #tpu.memory_space<vmem>>, vector<16x128xf32>,
    } else {
    }
    %c0_i32_4 = arith.constant 0 : i32
    %6 = arith.cmpi ne, %arg2, %c0_i32_4 : i32
    %7 = arith.extui %6 : i1 to i32
    %c0_i32_5 = arith.constant 0 : i32
    %8 = arith.cmpi ne, %7, %c0_i32_5 : i32
    scf.if %8 {
      %c0_8 = arith.constant 0 : index
      %c0_9 = arith.constant 0 : index
      %12 = vector.load %arg7[%c0_8, %c0_9] : memref<16x128xf32, #tpu.memory_space<vmem>>, vector<16x128xf32>
      %13 = arith.addf %12, %2 : vector<16x128xf32>
      %c0_10 = arith.constant 0 : index
      %c0_11 = arith.constant 0 : index
      %14 = vector.load %arg7[%c0_10, %c0_11] : memref<16x128xf32, #tpu.memory_space<vmem>>, vector<16x128xf32>
      tpu.vector_store %arg7[%c0_10, %c0_11], %13 {strides = array<i32>} : memref<16x128xf32, #tpu.memory_space<vmem>>, vector<16x128xf32>,
    } else {
    }
    %c0_i32_6 = arith.constant 0 : i32
    %9 = arith.cmpi eq, %arg2, %c0_i32_6 : i32
    %10 = arith.extui %9 : i1 to i32
    %c0_i32_7 = arith.constant 0 : i32
    %11 = arith.cmpi ne, %10, %c0_i32_7 : i32
    scf.if %11 {
      %c0_8 = arith.constant 0 : index
      %c0_9 = arith.constant 0 : index
      %12 = vector.load %arg7[%c0_8, %c0_9] : memref<16x128xf32, #tpu.memory_space<vmem>>, vector<16x128xf32>
      %c0_10 = arith.constant 0 : index
      %c0_11 = arith.constant 0 : index
      %13 = vector.load %arg3[%c0_10, %c0_11] : memref<16x1xf32, #tpu.memory_space<vmem>>, vector<16x1xf32>
      %14 = vector.broadcast %13 : vector<16x1xf32> to vector<16x128xf32>
      %15 = arith.mulf %12, %14 : vector<16x128xf32>
      %c0_12 = arith.constant 0 : index
      %c0_13 = arith.constant 0 : index
      %16 = vector.load %arg6[%c0_12, %c0_13] : memref<1x128xf32, #tpu.memory_space<vmem>>, vector<1x128xf32>
      %17 = vector.broadcast %16 : vector<1x128xf32> to vector<16x128xf32>
      %18 = arith.addf %15, %17 : vector<16x128xf32>
      %c0_14 = arith.constant 0 : index
      %c0_15 = arith.constant 0 : index
      %19 = vector.load %arg7[%c0_14, %c0_15] : memref<16x128xf32, #tpu.memory_space<vmem>>, vector<16x128xf32>
      tpu.vector_store %arg7[%c0_14, %c0_15], %18 {strides = array<i32>} : memref<16x128xf32, #tpu.memory_space<vmem>>, vector<16x128xf32>,
    } else {
    }
    return
  }
  func.func @transform_0(%arg0: i32, %arg1: i32, %arg2: i32) -> (i32, i32) {
    %c0_i32 = arith.constant 0 : i32
    %c0_i32_0 = arith.constant 0 : i32
    return %arg0, %c0_i32 : i32, i32
  }
  func.func @transform_1(%arg0: i32, %arg1: i32, %arg2: i32) -> (i32, i32) {
    %c0_i32 = arith.constant 0 : i32
    return %arg0, %arg2 : i32, i32
  }
  func.func @transform_2(%arg0: i32, %arg1: i32, %arg2: i32) -> (i32, i32) {
    %c0_i32 = arith.constant 0 : i32
    return %arg2, %arg1 : i32, i32
  }
  func.func @transform_3(%arg0: i32, %arg1: i32, %arg2: i32) -> (i32, i32) {
    %c0_i32 = arith.constant 0 : i32
    %c0_i32_0 = arith.constant 0 : i32
    return %c0_i32, %arg1 : i32, i32
  }
  func.func @transform_4(%arg0: i32, %arg1: i32, %arg2: i32) -> (i32, i32) {
    %c0_i32 = arith.constant 0 : i32
    return %arg0, %arg1 : i32, i32
  }
}

module attributes {stable_mosaic.version = 11 : i64} {
  func.func @_seq_absmax_kernel(%arg0: i32, %arg1: i32, %arg2: i32, %arg3: memref<1x8x128xf32, #tpu.memory_space<vmem>>, %arg4: memref<1x1x128xf32, #tpu.memory_space<vmem>>, %arg5: memref<1x1x128xf32, #tpu.memory_space<vmem>>) attributes {dimension_semantics = [#tpu.dimension_semantics<parallel>, #tpu.dimension_semantics<parallel>, #tpu.dimension_semantics<arbitrary>], iteration_bounds = array<i64: 2, 1, 1>, scalar_prefetch = 0 : i64, scratch_operands = 0 : i64, tpu.core_type = #tpu.core_type<tc>, window_params = [{transform_indices = @transform_0, window_bounds = array<i64: 1, 8, 128>}, {transform_indices = @transform_1, window_bounds = array<i64: 1, 1, 128>}, {transform_indices = @transform_2, window_bounds = array<i64: 1, 1, 128>}]} {
    %c0_i32 = arith.constant 0 : i32
    %0 = arith.cmpi eq, %arg2, %c0_i32 : i32
    %1 = arith.extui %0 : i1 to i32
    %c0_i32_0 = arith.constant 0 : i32
    %2 = arith.cmpi ne, %1, %c0_i32_0 : i32
    scf.if %2 {
      %cst_11 = arith.constant 0.000000e+00 : f32
      %13 = vector.broadcast %cst_11 : f32 to vector<1x1x128xf32>
      %c0_12 = arith.constant 0 : index
      %c0_13 = arith.constant 0 : index
      %c0_14 = arith.constant 0 : index
      %14 = vector.load %arg4[%c0_12, %c0_13, %c0_14] : memref<1x1x128xf32, #tpu.memory_space<vmem>>, vector<1x1x128xf32>
      tpu.vector_store %arg4[%c0_12, %c0_13, %c0_14], %13 {strides = array<i32>} : memref<1x1x128xf32, #tpu.memory_space<vmem>>, vector<1x1x128xf32>,
      %cst_15 = arith.constant 0.000000e+00 : f32
      %15 = vector.broadcast %cst_15 : f32 to vector<1x1x128xf32>
      %c0_16 = arith.constant 0 : index
      %c0_17 = arith.constant 0 : index
      %c0_18 = arith.constant 0 : index
      %16 = vector.load %arg5[%c0_16, %c0_17, %c0_18] : memref<1x1x128xf32, #tpu.memory_space<vmem>>, vector<1x1x128xf32>
      tpu.vector_store %arg5[%c0_16, %c0_17, %c0_18], %15 {strides = array<i32>} : memref<1x1x128xf32, #tpu.memory_space<vmem>>, vector<1x1x128xf32>,
    } else {
    }
    %c0 = arith.constant 0 : index
    %c0_1 = arith.constant 0 : index
    %c0_2 = arith.constant 0 : index
    %3 = vector.load %arg4[%c0, %c0_1, %c0_2] : memref<1x1x128xf32, #tpu.memory_space<vmem>>, vector<1x1x128xf32>
    %c0_3 = arith.constant 0 : index
    %c0_4 = arith.constant 0 : index
    %c0_5 = arith.constant 0 : index
    %4 = vector.load %arg3[%c0_3, %c0_4, %c0_5] : memref<1x8x128xf32, #tpu.memory_space<vmem>>, vector<1x8x128xf32>
    %5 = math.absf %4 : vector<1x8x128xf32>
    %cst = arith.constant dense<0xFF800000> : vector<1x128xf32>
    %6 = vector.multi_reduction <maximumf>, %5, %cst [1] : vector<1x8x128xf32> to vector<1x128xf32>
    %7 = vector.shape_cast %6 : vector<1x128xf32> to vector<1x1x128xf32>
    %8 = arith.maximumf %3, %7 : vector<1x1x128xf32>
    %c0_6 = arith.constant 0 : index
    %c0_7 = arith.constant 0 : index
    %c0_8 = arith.constant 0 : index
    %9 = vector.load %arg4[%c0_6, %c0_7, %c0_8] : memref<1x1x128xf32, #tpu.memory_space<vmem>>, vector<1x1x128xf32>
    tpu.vector_store %arg4[%c0_6, %c0_7, %c0_8], %8 {strides = array<i32>} : memref<1x1x128xf32, #tpu.memory_space<vmem>>, vector<1x1x128xf32>,
    %c0_i32_9 = arith.constant 0 : i32
    %10 = arith.cmpi eq, %arg2, %c0_i32_9 : i32
    %11 = arith.extui %10 : i1 to i32
    %c0_i32_10 = arith.constant 0 : i32
    %12 = arith.cmpi ne, %11, %c0_i32_10 : i32
    scf.if %12 {
      %c0_11 = arith.constant 0 : index
      %c0_12 = arith.constant 0 : index
      %c0_13 = arith.constant 0 : index
      %13 = vector.load %arg4[%c0_11, %c0_12, %c0_13] : memref<1x1x128xf32, #tpu.memory_space<vmem>>, vector<1x1x128xf32>
      %cst_14 = arith.constant 9.99999974E-6 : f32
      %14 = vector.broadcast %cst_14 : f32 to vector<1x1x128xf32>
      %15 = arith.maximumf %13, %14 : vector<1x1x128xf32>
      %c0_15 = arith.constant 0 : index
      %c0_16 = arith.constant 0 : index
      %c0_17 = arith.constant 0 : index
      %16 = vector.load %arg4[%c0_15, %c0_16, %c0_17] : memref<1x1x128xf32, #tpu.memory_space<vmem>>, vector<1x1x128xf32>
      tpu.vector_store %arg4[%c0_15, %c0_16, %c0_17], %15 {strides = array<i32>} : memref<1x1x128xf32, #tpu.memory_space<vmem>>, vector<1x1x128xf32>,
      %cst_18 = arith.constant 1.000000e+00 : f32
      %17 = vector.broadcast %cst_18 : f32 to vector<1x1x128xf32>
      %18 = arith.divf %17, %15 : vector<1x1x128xf32>
      %c0_19 = arith.constant 0 : index
      %c0_20 = arith.constant 0 : index
      %c0_21 = arith.constant 0 : index
      %19 = vector.load %arg5[%c0_19, %c0_20, %c0_21] : memref<1x1x128xf32, #tpu.memory_space<vmem>>, vector<1x1x128xf32>
      tpu.vector_store %arg5[%c0_19, %c0_20, %c0_21], %18 {strides = array<i32>} : memref<1x1x128xf32, #tpu.memory_space<vmem>>, vector<1x1x128xf32>,
    } else {
    }
    return
  }
  func.func @transform_0(%arg0: i32, %arg1: i32, %arg2: i32) -> (i32, i32, i32) {
    %c0_i32 = arith.constant 0 : i32
    return %arg0, %arg2, %arg1 : i32, i32, i32
  }
  func.func @transform_1(%arg0: i32, %arg1: i32, %arg2: i32) -> (i32, i32, i32) {
    %c0_i32 = arith.constant 0 : i32
    %c0_i32_0 = arith.constant 0 : i32
    return %arg0, %c0_i32, %arg1 : i32, i32, i32
  }
  func.func @transform_2(%arg0: i32, %arg1: i32, %arg2: i32) -> (i32, i32, i32) {
    %c0_i32 = arith.constant 0 : i32
    %c0_i32_0 = arith.constant 0 : i32
    return %arg0, %c0_i32, %arg1 : i32, i32, i32
  }
}

module attributes {stable_mosaic.version = 11 : i64} {
  func.func @_row_amax_kernel(%arg0: i32, %arg1: i32, %arg2: i32, %arg3: memref<1x8x128xf32, #tpu.memory_space<vmem>>, %arg4: memref<1x1x128xf32, #tpu.memory_space<vmem>>, %arg5: memref<1x8x1xf32, #tpu.memory_space<vmem>>, %arg6: memref<1x8x1xf32, #tpu.memory_space<vmem>>) attributes {dimension_semantics = [#tpu.dimension_semantics<parallel>, #tpu.dimension_semantics<parallel>, #tpu.dimension_semantics<arbitrary>], iteration_bounds = array<i64: 2, 1, 1>, scalar_prefetch = 0 : i64, scratch_operands = 0 : i64, tpu.core_type = #tpu.core_type<tc>, window_params = [{transform_indices = @transform_0, window_bounds = array<i64: 1, 8, 128>}, {transform_indices = @transform_1, window_bounds = array<i64: 1, 1, 128>}, {transform_indices = @transform_2, window_bounds = array<i64: 1, 8, 1>}, {transform_indices = @transform_3, window_bounds = array<i64: 1, 8, 1>}]} {
    %c0_i32 = arith.constant 0 : i32
    %0 = arith.cmpi eq, %arg2, %c0_i32 : i32
    %1 = arith.extui %0 : i1 to i32
    %c0_i32_0 = arith.constant 0 : i32
    %2 = arith.cmpi ne, %1, %c0_i32_0 : i32
    scf.if %2 {
      %cst_14 = arith.constant 0.000000e+00 : f32
      %16 = vector.broadcast %cst_14 : f32 to vector<1x8x1xf32>
      %c0_15 = arith.constant 0 : index
      %c0_16 = arith.constant 0 : index
      %c0_17 = arith.constant 0 : index
      %17 = vector.load %arg5[%c0_15, %c0_16, %c0_17] : memref<1x8x1xf32, #tpu.memory_space<vmem>>, vector<1x8x1xf32>
      tpu.vector_store %arg5[%c0_15, %c0_16, %c0_17], %16 {strides = array<i32>} : memref<1x8x1xf32, #tpu.memory_space<vmem>>, vector<1x8x1xf32>,
      %cst_18 = arith.constant 0.000000e+00 : f32
      %18 = vector.broadcast %cst_18 : f32 to vector<1x8x1xf32>
      %c0_19 = arith.constant 0 : index
      %c0_20 = arith.constant 0 : index
      %c0_21 = arith.constant 0 : index
      %19 = vector.load %arg6[%c0_19, %c0_20, %c0_21] : memref<1x8x1xf32, #tpu.memory_space<vmem>>, vector<1x8x1xf32>
      tpu.vector_store %arg6[%c0_19, %c0_20, %c0_21], %18 {strides = array<i32>} : memref<1x8x1xf32, #tpu.memory_space<vmem>>, vector<1x8x1xf32>,
    } else {
    }
    %c0 = arith.constant 0 : index
    %c0_1 = arith.constant 0 : index
    %c0_2 = arith.constant 0 : index
    %3 = vector.load %arg3[%c0, %c0_1, %c0_2] : memref<1x8x128xf32, #tpu.memory_space<vmem>>, vector<1x8x128xf32>
    %c0_3 = arith.constant 0 : index
    %c0_4 = arith.constant 0 : index
    %c0_5 = arith.constant 0 : index
    %4 = vector.load %arg4[%c0_3, %c0_4, %c0_5] : memref<1x1x128xf32, #tpu.memory_space<vmem>>, vector<1x1x128xf32>
    %5 = vector.broadcast %4 : vector<1x1x128xf32> to vector<1x8x128xf32>
    %6 = arith.mulf %3, %5 : vector<1x8x128xf32>
    %7 = math.absf %6 : vector<1x8x128xf32>
    %c0_6 = arith.constant 0 : index
    %c0_7 = arith.constant 0 : index
    %c0_8 = arith.constant 0 : index
    %8 = vector.load %arg5[%c0_6, %c0_7, %c0_8] : memref<1x8x1xf32, #tpu.memory_space<vmem>>, vector<1x8x1xf32>
    %cst = arith.constant dense<0xFF800000> : vector<1x8xf32>
    %9 = vector.multi_reduction <maximumf>, %7, %cst [2] : vector<1x8x128xf32> to vector<1x8xf32>
    %10 = vector.shape_cast %9 : vector<1x8xf32> to vector<1x8x1xf32>
    %11 = arith.maximumf %8, %10 : vector<1x8x1xf32>
    %c0_9 = arith.constant 0 : index
    %c0_10 = arith.constant 0 : index
    %c0_11 = arith.constant 0 : index
    %12 = vector.load %arg5[%c0_9, %c0_10, %c0_11] : memref<1x8x1xf32, #tpu.memory_space<vmem>>, vector<1x8x1xf32>
    tpu.vector_store %arg5[%c0_9, %c0_10, %c0_11], %11 {strides = array<i32>} : memref<1x8x1xf32, #tpu.memory_space<vmem>>, vector<1x8x1xf32>,
    %c0_i32_12 = arith.constant 0 : i32
    %13 = arith.cmpi eq, %arg2, %c0_i32_12 : i32
    %14 = arith.extui %13 : i1 to i32
    %c0_i32_13 = arith.constant 0 : i32
    %15 = arith.cmpi ne, %14, %c0_i32_13 : i32
    scf.if %15 {
      %c0_14 = arith.constant 0 : index
      %c0_15 = arith.constant 0 : index
      %c0_16 = arith.constant 0 : index
      %16 = vector.load %arg5[%c0_14, %c0_15, %c0_16] : memref<1x8x1xf32, #tpu.memory_space<vmem>>, vector<1x8x1xf32>
      %cst_17 = arith.constant 9.99999974E-6 : f32
      %17 = vector.broadcast %cst_17 : f32 to vector<1x8x1xf32>
      %18 = arith.maximumf %16, %17 : vector<1x8x1xf32>
      %cst_18 = arith.constant 1.400000e+01 : f32
      %19 = vector.broadcast %cst_18 : f32 to vector<1x8x1xf32>
      %20 = arith.divf %18, %19 : vector<1x8x1xf32>
      %c0_19 = arith.constant 0 : index
      %c0_20 = arith.constant 0 : index
      %c0_21 = arith.constant 0 : index
      %21 = vector.load %arg5[%c0_19, %c0_20, %c0_21] : memref<1x8x1xf32, #tpu.memory_space<vmem>>, vector<1x8x1xf32>
      tpu.vector_store %arg5[%c0_19, %c0_20, %c0_21], %20 {strides = array<i32>} : memref<1x8x1xf32, #tpu.memory_space<vmem>>, vector<1x8x1xf32>,
      %cst_22 = arith.constant 1.400000e+01 : f32
      %22 = vector.broadcast %cst_22 : f32 to vector<1x8x1xf32>
      %23 = arith.divf %22, %18 : vector<1x8x1xf32>
      %c0_23 = arith.constant 0 : index
      %c0_24 = arith.constant 0 : index
      %c0_25 = arith.constant 0 : index
      %24 = vector.load %arg6[%c0_23, %c0_24, %c0_25] : memref<1x8x1xf32, #tpu.memory_space<vmem>>, vector<1x8x1xf32>
      tpu.vector_store %arg6[%c0_23, %c0_24, %c0_25], %23 {strides = array<i32>} : memref<1x8x1xf32, #tpu.memory_space<vmem>>, vector<1x8x1xf32>,
    } else {
    }
    return
  }
  func.func @transform_0(%arg0: i32, %arg1: i32, %arg2: i32) -> (i32, i32, i32) {
    %c0_i32 = arith.constant 0 : i32
    return %arg0, %arg1, %arg2 : i32, i32, i32
  }
  func.func @transform_1(%arg0: i32, %arg1: i32, %arg2: i32) -> (i32, i32, i32) {
    %c0_i32 = arith.constant 0 : i32
    %c0_i32_0 = arith.constant 0 : i32
    return %arg0, %c0_i32, %arg2 : i32, i32, i32
  }
  func.func @transform_2(%arg0: i32, %arg1: i32, %arg2: i32) -> (i32, i32, i32) {
    %c0_i32 = arith.constant 0 : i32
    %c0_i32_0 = arith.constant 0 : i32
    return %arg0, %arg1, %c0_i32 : i32, i32, i32
  }
  func.func @transform_3(%arg0: i32, %arg1: i32, %arg2: i32) -> (i32, i32, i32) {
    %c0_i32 = arith.constant 0 : i32
    %c0_i32_0 = arith.constant 0 : i32
    return %arg0, %arg1, %c0_i32 : i32, i32, i32
  }
}

module attributes {stable_mosaic.version = 11 : i64} {
  func.func @_out_apply_kernel(%arg0: i32, %arg1: i32, %arg2: i32, %arg3: memref<1x8x128xf32, #tpu.memory_space<vmem>>, %arg4: memref<1x1x128xf32, #tpu.memory_space<vmem>>, %arg5: memref<1x1x128xf32, #tpu.memory_space<vmem>>, %arg6: memref<1x8x1xf32, #tpu.memory_space<vmem>>, %arg7: memref<1x8x1xf32, #tpu.memory_space<vmem>>, %arg8: memref<1x8x128xf32, #tpu.memory_space<vmem>>) attributes {dimension_semantics = [#tpu.dimension_semantics<parallel>, #tpu.dimension_semantics<parallel>, #tpu.dimension_semantics<parallel>], iteration_bounds = array<i64: 2, 1, 1>, scalar_prefetch = 0 : i64, scratch_operands = 0 : i64, tpu.core_type = #tpu.core_type<tc>, window_params = [{transform_indices = @transform_0, window_bounds = array<i64: 1, 8, 128>}, {transform_indices = @transform_1, window_bounds = array<i64: 1, 1, 128>}, {transform_indices = @transform_2, window_bounds = array<i64: 1, 1, 128>}, {transform_indices = @transform_3, window_bounds = array<i64: 1, 8, 1>}, {transform_indices = @transform_4, window_bounds = array<i64: 1, 8, 1>}, {transform_indices = @transform_5, window_bounds = array<i64: 1, 8, 128>}]} {
    %c0 = arith.constant 0 : index
    %c0_0 = arith.constant 0 : index
    %c0_1 = arith.constant 0 : index
    %0 = vector.load %arg3[%c0, %c0_0, %c0_1] : memref<1x8x128xf32, #tpu.memory_space<vmem>>, vector<1x8x128xf32>
    %c0_2 = arith.constant 0 : index
    %c0_3 = arith.constant 0 : index
    %c0_4 = arith.constant 0 : index
    %1 = vector.load %arg4[%c0_2, %c0_3, %c0_4] : memref<1x1x128xf32, #tpu.memory_space<vmem>>, vector<1x1x128xf32>
    %2 = vector.broadcast %1 : vector<1x1x128xf32> to vector<1x8x128xf32>
    %3 = arith.mulf %0, %2 : vector<1x8x128xf32>
    %c0_5 = arith.constant 0 : index
    %c0_6 = arith.constant 0 : index
    %c0_7 = arith.constant 0 : index
    %4 = vector.load %arg7[%c0_5, %c0_6, %c0_7] : memref<1x8x1xf32, #tpu.memory_space<vmem>>, vector<1x8x1xf32>
    %5 = vector.broadcast %4 : vector<1x8x1xf32> to vector<1x8x128xf32>
    %6 = arith.mulf %3, %5 : vector<1x8x128xf32>
    %cst = arith.constant -1.400000e+01 : f32
    %cst_8 = arith.constant 1.400000e+01 : f32
    %7 = vector.broadcast %cst : f32 to vector<1x8x128xf32>
    %8 = arith.maximumf %7, %6 : vector<1x8x128xf32>
    %9 = vector.broadcast %cst_8 : f32 to vector<1x8x128xf32>
    %10 = arith.minimumf %9, %8 : vector<1x8x128xf32>
    %11 = math.absf %10 : vector<1x8x128xf32>
    %12 = tpu.bitcast %11 : vector<1x8x128xf32> -> vector<1x8x128xi32>
    %c23_i32 = arith.constant 23 : i32
    %13 = vector.broadcast %c23_i32 : i32 to vector<1x8x128xi32>
    %14 = arith.shrsi %12, %13 : vector<1x8x128xi32>
    %c127_i32 = arith.constant 127 : i32
    %15 = vector.broadcast %c127_i32 : i32 to vector<1x8x128xi32>
    %16 = arith.subi %14, %15 : vector<1x8x128xi32>
    %c1_i32 = arith.constant 1 : i32
    %17 = vector.broadcast %c1_i32 : i32 to vector<1x8x128xi32>
    %18 = arith.maxsi %16, %17 : vector<1x8x128xi32>
    %c125_i32 = arith.constant 125 : i32
    %19 = vector.broadcast %c125_i32 : i32 to vector<1x8x128xi32>
    %20 = arith.addi %18, %19 : vector<1x8x128xi32>
    %c23_i32_9 = arith.constant 23 : i32
    %21 = vector.broadcast %c23_i32_9 : i32 to vector<1x8x128xi32>
    %22 = arith.shli %20, %21 : vector<1x8x128xi32>
    %23 = tpu.bitcast %22 : vector<1x8x128xi32> -> vector<1x8x128xf32>
    %c2_i32 = arith.constant 2 : i32
    %24 = vector.broadcast %c2_i32 : i32 to vector<1x8x128xi32>
    %25 = arith.subi %24, %18 : vector<1x8x128xi32>
    %c127_i32_10 = arith.constant 127 : i32
    %26 = vector.broadcast %c127_i32_10 : i32 to vector<1x8x128xi32>
    %27 = arith.addi %25, %26 : vector<1x8x128xi32>
    %c23_i32_11 = arith.constant 23 : i32
    %28 = vector.broadcast %c23_i32_11 : i32 to vector<1x8x128xi32>
    %29 = arith.shli %27, %28 : vector<1x8x128xi32>
    %30 = tpu.bitcast %29 : vector<1x8x128xi32> -> vector<1x8x128xf32>
    %31 = arith.mulf %10, %30 : vector<1x8x128xf32>
    %32 = math.roundeven %31 : vector<1x8x128xf32>
    %33 = arith.mulf %32, %23 : vector<1x8x128xf32>
    %c0_12 = arith.constant 0 : index
    %c0_13 = arith.constant 0 : index
    %c0_14 = arith.constant 0 : index
    %34 = vector.load %arg6[%c0_12, %c0_13, %c0_14] : memref<1x8x1xf32, #tpu.memory_space<vmem>>, vector<1x8x1xf32>
    %35 = vector.broadcast %34 : vector<1x8x1xf32> to vector<1x8x128xf32>
    %36 = arith.mulf %33, %35 : vector<1x8x128xf32>
    %c0_15 = arith.constant 0 : index
    %c0_16 = arith.constant 0 : index
    %c0_17 = arith.constant 0 : index
    %37 = vector.load %arg5[%c0_15, %c0_16, %c0_17] : memref<1x1x128xf32, #tpu.memory_space<vmem>>, vector<1x1x128xf32>
    %38 = vector.broadcast %37 : vector<1x1x128xf32> to vector<1x8x128xf32>
    %39 = arith.mulf %36, %38 : vector<1x8x128xf32>
    %c0_18 = arith.constant 0 : index
    %c0_19 = arith.constant 0 : index
    %c0_20 = arith.constant 0 : index
    %40 = vector.load %arg8[%c0_18, %c0_19, %c0_20] : memref<1x8x128xf32, #tpu.memory_space<vmem>>, vector<1x8x128xf32>
    tpu.vector_store %arg8[%c0_18, %c0_19, %c0_20], %39 {strides = array<i32>} : memref<1x8x128xf32, #tpu.memory_space<vmem>>, vector<1x8x128xf32>,
    return
  }
  func.func @transform_0(%arg0: i32, %arg1: i32, %arg2: i32) -> (i32, i32, i32) {
    %c0_i32 = arith.constant 0 : i32
    return %arg0, %arg1, %arg2 : i32, i32, i32
  }
  func.func @transform_1(%arg0: i32, %arg1: i32, %arg2: i32) -> (i32, i32, i32) {
    %c0_i32 = arith.constant 0 : i32
    %c0_i32_0 = arith.constant 0 : i32
    return %arg0, %c0_i32, %arg2 : i32, i32, i32
  }
  func.func @transform_2(%arg0: i32, %arg1: i32, %arg2: i32) -> (i32, i32, i32) {
    %c0_i32 = arith.constant 0 : i32
    %c0_i32_0 = arith.constant 0 : i32
    return %arg0, %c0_i32, %arg2 : i32, i32, i32
  }
  func.func @transform_3(%arg0: i32, %arg1: i32, %arg2: i32) -> (i32, i32, i32) {
    %c0_i32 = arith.constant 0 : i32
    %c0_i32_0 = arith.constant 0 : i32
    return %arg0, %arg1, %c0_i32 : i32, i32, i32
  }
  func.func @transform_4(%arg0: i32, %arg1: i32, %arg2: i32) -> (i32, i32, i32) {
    %c0_i32 = arith.constant 0 : i32
    %c0_i32_0 = arith.constant 0 : i32
    return %arg0, %arg1, %c0_i32 : i32, i32, i32
  }
  func.func @transform_5(%arg0: i32, %arg1: i32, %arg2: i32) -> (i32, i32, i32) {
    %c0_i32 = arith.constant 0 : i32
    return %arg0, %arg1, %arg2 : i32, i32, i32
  }
}

</mosaic_0001>

<bundles_post_ra>
// kernel: act_quant_wrapper_forward.6
= control target key start
LH: loop header
LB: loop body
LE: loop exit
PB: predicated region body
PF: predicated region fallthrough
CT: control target
= control target key end

     0   :  { %vm14_vm0 = vcmask 7168   ;;  %v100_v1 = vmov 0.0   ;;  %v101_v5 = vmov 438.0   ;;  %s175_s0 = inlined_call_operand.vmem [shape: f32[16,128], index: 0, kind: input, shape index: {}]   ;;  %s176_s1 = inlined_call_operand.vmem [shape: f32[16,1], index: 1, kind: output, shape index: {0}]   ;;  %s177_s2 = inlined_call_operand.vmem [shape: f32[16,1], index: 2, kind: output, shape index: {1}]  }
   0x1   :  { %v21_v0 = vld [vmem:[%s175_s0] sm:$0xff]  ;;  %15 = vst.msk [vmem:[%s176_s1] sm:$0xff] %vm14_vm0, %v100_v1  ;;  %v22_v3 = vld [vmem:[%s175_s0 + $0x8] sm:$0xff]  ;;  %94 = vrcp.f32 %v101_v5 }
   0x2   :  { %v23_v2 = vand.u32 2147483647, %v21_v0  ;;  %17 = vst.msk [vmem:[%s177_s2] sm:$0xff] %vm14_vm0, %v100_v1  ;;  %v24_v4 = vand.u32 2147483647, %v22_v3 }
   0x3   :  { %18 = vst.msk [vmem:[%s177_s2 + $0x8] sm:$0xff] %vm14_vm0, %v100_v1 }
   0x4   :  { %25 = vmax.xlane.f32.xlu0 %v23_v2  ;;  %16 = vst.msk [vmem:[%s176_s1 + $0x8] sm:$0xff] %vm14_vm0, %v100_v1 }
   0x7   :  { %v95_v6 = vpop.eup %94 }
   0x8   :  { %v42_v7 = vmul.f32 438.0, %v95_v6  ;;  %v19_v8 = vld [vmem:[%s176_s1] sm:$0xff]  ;;  %vm46_vm1 = vweird.f32 %v95_v6 }
   0xa   :  { %v43_v9 = vsub.f32 1.0, %v42_v7 }
   0xb   :  { %v20_v14 = vld [vmem:[%s176_s1 + $0x8] sm:$0xff] }
   0xc   :  { %27 = vmax.xlane.f32.xlu0 %v24_v4  ;;  %v44_v12 = vmul.f32 %v95_v6, %v43_v9 }
   0xe   :  { %v45_v13 = vadd.f32 %v95_v6, %v44_v12 }
  0x10   :  { %v47_v17 = vsel %vm46_vm1, %v95_v6, %v45_v13 }
  0x77   :  { %v26_v10 = vpop.xlane.xlu0 %25 }
  0x78   :  { %v29_v11 = vmax.f32 %v19_v8, %v26_v10 }
  0x7a   :  { %32 = vst.msk [vmem:[%s176_s1] sm:$0xff] %vm14_vm0, %v29_v11 }
  0x7f   :  { %v28_v15 = vpop.xlane.xlu0 %27 }
  0x80   :  { %v30_v16 = vmax.f32 %v20_v14, %v28_v15 }
  0x81   :  { %v37_v18 = vld [vmem:[%s176_s1] sm:$0xff] }
  0x82   :  { %v39_v19 = vmax.f32 %v37_v18, 1e-05  ;;  %33 = vst.msk [vmem:[%s176_s1 + $0x8] sm:$0xff] %vm14_vm0, %v30_v16 }
  0x84   :  { %v48_v20 = vmul.f32 %v47_v17, %v39_v19  ;;  %96 = vrcp.f32 %v39_v19  ;;  %v63_v27 = vand.u32 2147483648, %v39_v19  ;;  %v61_v29 = vand.u32 2147483647, %v39_v19 }
  0x85   :  { %vm57_vm3 = vweird.f32 %v39_v19 }
  0x86   :  { %50 = vst.msk [vmem:[%s176_s1] sm:$0xff] %vm14_vm0, %v48_v20  ;;  %v64_v32 = vor.u32 1.1754944e-38, %v63_v27  ;;  %vm62_vm5 = vcmp.eq.f32.partialorder %v61_v29, 8.507059e+37 }
  0x89   :  { %v38_v21 = vld [vmem:[%s176_s1 + $0x8] sm:$0xff] }
  0x8a   :  { %v97_v22 = vpop.eup %96  ;;  %v40_v23 = vmax.f32 %v38_v21, 1e-05 }
  0x8b   :  { %v53_v24 = vmul.f32 %v97_v22, %v39_v19  ;;  %vm58_vm2 = vweird.f32 %v97_v22 }
  0x8c   :  { %v49_v25 = vmul.f32 %v47_v17, %v40_v23  ;;  %98 = vrcp.f32 %v40_v23  ;;  %vm59_vm4 = vmor %vm57_vm3, %vm58_vm2  ;;  %v78_v38 = vand.u32 2147483648, %v40_v23  ;;  %v76_v40 = vand.u32 2147483647, %v40_v23 }
  0x8d   :  { %v54_v26 = vsub.f32 1.0, %v53_v24  ;;  %vm72_vm7 = vweird.f32 %v40_v23 }
  0x8e   :  { %51 = vst.msk [vmem:[%s176_s1 + $0x8] sm:$0xff] %vm14_vm0, %v49_v25  ;;  %v79_v42 = vor.u32 1.1754944e-38, %v78_v38  ;;  %vm77_vm9 = vcmp.eq.f32.partialorder %v76_v40, 8.507059e+37 }
  0x8f   :  { %v55_v28 = vmul.f32 %v97_v22, %v54_v26 }
  0x91   :  { %v56_v30 = vadd.f32 %v97_v22, %v55_v28 }
  0x92   :  { %v99_v31 = vpop.eup %98 }
  0x93   :  { %v60_v33 = vsel %vm59_vm4, %v97_v22, %v56_v30  ;;  %v68_v34 = vmul.f32 %v99_v31, %v40_v23  ;;  %vm73_vm6 = vweird.f32 %v99_v31 }
  0x94   :  { %v65_v35 = vsel %vm62_vm5, %v64_v32, %v60_v33  ;;  %vm74_vm8 = vmor %vm72_vm7, %vm73_vm6 }
  0x95   :  { %v66_v36 = vmul.f32 438.0, %v65_v35  ;;  %v69_v37 = vsub.f32 1.0, %v68_v34 }
  0x97   :  { %82 = vst.msk [vmem:[%s177_s2] sm:$0xff] %vm14_vm0, %v66_v36  ;;  %v70_v39 = vmul.f32 %v99_v31, %v69_v37 }
  0x99   :  { %v71_v41 = vadd.f32 %v99_v31, %v70_v39 }
  0x9b   :  { %v75_v43 = vsel %vm74_vm8, %v99_v31, %v71_v41 }
  0x9c   :  { %v80_v44 = vsel %vm77_vm9, %v79_v42, %v75_v43 }
  0x9d   :  { %v81_v45 = vmul.f32 438.0, %v80_v44 }
  0x9f   :  { %83 = vst.msk [vmem:[%s177_s2 + $0x8] sm:$0xff] %vm14_vm0, %v81_v45 }

// kernel: act_quant_wrapper_forward.7
= control target key start
LH: loop header
LB: loop body
LE: loop exit
PB: predicated region body
PF: predicated region fallthrough
CT: control target
= control target key end

     0   :  { %v98_v0 = vmov 0   ;;  %s129_s1 = inlined_call_operand.vmem [shape: f32[16,1], index: 1, kind: input, shape index: {}]   ;;  %s130_s0 = inlined_call_operand.vmem [shape: f32[16,128], index: 0, kind: input, shape index: {}]   ;;  %s131_s2 = inlined_call_operand.vmem [shape: bf16[16,128], index: 2, kind: output, shape index: {}]  }
   0x1   :  { %97 = vset.pattern.permute.xlu0 %v98_v0  ;;  %v13_v1 = vld [vmem:[%s129_s1] sm:$0xff]  ;;  %v14_v2 = vld [vmem:[%s129_s1 + $0x8] sm:$0xff] }
   0x2   :  { %17 = vperm.xlu0 %97, %v13_v1   ;;  %v11_v3 = vld [vmem:[%s130_s0] sm:$0xff]  ;;  %v12_v8 = vld [vmem:[%s130_s0 + $0x8] sm:$0xff] }
   0xa   :  { %22 = vperm.xlu0 %97, %v14_v2  }
  0x74   :  { %v18_v4 = vpop.permute.xlu0 %17 }
  0x75   :  { %v25_v5 = vmul.f32 %v18_v4, %v11_v3 }
  0x77   :  { %v71_v6 = vclamps-f32 %v25_v5, 437.0 }
  0x79   :  { %v31_v7 = vand.u32 2147483647, %v71_v6 }
  0x7b   :  { %v35_v9 = vshra.s32 %v31_v7, 23 }
  0x7c   :  { %v23_v10 = vpop.permute.xlu0 %22 }
  0x7d   :  { %v73_v11 = vadd.s32 4294967169, %v35_v9  ;;  %v26_v12 = vmul.f32 %v23_v10, %v12_v8 }
  0x7f   :  { %vm39_vm0 = vcmp.gt.s32.totalorder %v73_v11, 4294967290  ;;  %v72_v13 = vclamps-f32 %v26_v12, 437.0 }
  0x80   :  { %v40_v14 = vsel %vm39_vm0, %v73_v11, 4294967290 }
  0x81   :  { %v49_v15 = vsub.s32 3, %v40_v14  ;;  %v32_v16 = vand.u32 2147483647, %v72_v13  ;;  %v43_v35 = vadd.s32 124, %v40_v14 }
  0x83   :  { %v51_v17 = vadd.s32 127, %v49_v15  ;;  %v36_v18 = vshra.s32 %v32_v16, 23  ;;  %v45_v42 = vshll.u32 %v43_v35, 23 }
  0x85   :  { %v53_v19 = vshll.u32 %v51_v17, 23  ;;  %v74_v20 = vadd.s32 4294967169, %v36_v18 }
  0x87   :  { %v57_v21 = vmul.f32 %v71_v6, %v53_v19  ;;  %vm41_vm1 = vcmp.gt.s32.totalorder %v74_v20, 4294967290 }
  0x88   :  { %v42_v22 = vsel %vm41_vm1, %v74_v20, 4294967290 }
  0x89   :  { %v82_v23 = vcvt.f32.s32 %v57_v21  ;;  %v50_v24 = vsub.s32 3, %v42_v22  ;;  %v85_v30 = vand.u32 2147483648, %v57_v21  ;;  %v80_v32 = vand.u32 2147483647, %v57_v21 }
  0x8a   :  { %v44_v36 = vadd.s32 124, %v42_v22 }
  0x8b   :  { %v83_v25 = vcvt.s32.f32 %v82_v23  ;;  %v52_v26 = vadd.s32 127, %v50_v24  ;;  %vm81_vm2 = vcmp.lt.f32.partialorder %v80_v32, 8388608.0 }
  0x8c   :  { %v46_v43 = vshll.u32 %v44_v36, 23 }
  0x8d   :  { %v54_v27 = vshll.u32 %v52_v26, 23  ;;  %v84_v28 = vand.u32 2147483647, %v83_v25 }
  0x8f   :  { %v58_v29 = vmul.f32 %v72_v13, %v54_v27  ;;  %v86_v33 = vor.u32 %v85_v30, %v84_v28 }
  0x91   :  { %v90_v31 = vcvt.f32.s32 %v58_v29  ;;  %v88_v37 = vand.u32 2147483647, %v58_v29  ;;  %v93_v39 = vand.u32 2147483648, %v58_v29  ;;  %v87_v40 = vsel %vm81_vm2, %v86_v33, %v57_v21 }
  0x92   :  { %v61_v45 = vmul.f32 %v87_v40, %v45_v42 }
  0x93   :  { %v91_v34 = vcvt.s32.f32 %v90_v31  ;;  %vm89_vm3 = vcmp.lt.f32.partialorder %v88_v37, 8388608.0 }
  0x95   :  { %v92_v38 = vand.u32 2147483647, %v91_v34 }
  0x97   :  { %v94_v41 = vor.u32 %v93_v39, %v92_v38 }
  0x99   :  { %v95_v44 = vsel %vm89_vm3, %v94_v41, %v58_v29 }
  0x9a   :  { %v62_v46 = vmul.f32 %v95_v44, %v46_v43 }
  0x9c   :  { %v78_v47 = vpack.c.bf16 %v62_v46, %v61_v45 }
  0x9e   :  { %79 = vst [vmem:[%s131_s2] sm:$0xff] %v78_v47  }

// kernel: act_quant_wrapper_forward.9
= control target key start
LH: loop header
LB: loop body
LE: loop exit
PB: predicated region body
PF: predicated region fallthrough
CT: control target
= control target key end

     0   :  { %s426_s9 = smov 0   ;;  %s428_s10 = smov 0   ;;  %s466_s0 = inlined_call_operand.vmem [shape: f32[2,8,128], index: 0, kind: input, shape index: {}]   ;;  %s467_s1 = inlined_call_operand.vmem [shape: f32[2,1,128], index: 1, kind: output, shape index: {0}]   ;;  %s468_s2 = inlined_call_operand.vmem [shape: f32[2,1,128], index: 2, kind: output, shape index: {1}]  }
   0x1   :  { %s430_s11 = smov 0  }
   0x2 LB: > { %s32_s12 = sadd.s32 1, %s404_s10  ;;  %p355_p0 = scmp.ge.s32.totalorder %s408_s11, 1  ;;  %s408_s11 = sphi %s430_s11, %s13_s11   ;;  %s404_s10 = sphi %s428_s10, %s470_s10   ;;  %s400_s9 = sphi %s426_s9, %s469_s9  }
   0x3   : > { %p34_p1 = scmp.ge.s32.totalorder %s32_s12, 2  ;;  %p147_p2 = scmp.lt.s32.totalorder %s408_s11, 3 }
   0x5   : > { %s472_s12 = smov (%p34_p1, %s32_s12), 0  ;;  %p148_p3 = pnand %p355_p0, %p147_p2 }
   0x6   : > { %p181_p4 = scmp.lt.s32.totalorder (!%p148_p3), %s400_s9, 1 }
   0x7   : > { %151 = sbr.rel (%p148_p3) target bundleno = 60 (0x3c), region = 24 }
   0xc   : > { %s474_s9 = smov (!%p181_p4, %s400_s9), 1  ;;  %v410_v0 = vmov 0.0  }
   0xd   : > { %s196_s15 = scalar_lea.vmem %s467_s1, %s474_s9  ;;  %s356_s16 = sshll.u32 %s474_s9, 3 }
   0xe   : > { %207 = vst [vmem:[%s196_s15] sm:$0x1] %v410_v0  ;;  %s190_s19 = scalar_lea.vmem %s466_s0, %s356_s16  ;;  %s453_s22 = scalar_lea.vmem %s468_s2, %s474_s9 }
   0xf   : > { %v210_v1 = vld [vmem:[%s190_s19] sm:$0xff]  ;;  %208 = vst [vmem:[%s453_s22] sm:$0x1] %v410_v0 }
  0x10   : > { %v211_v2 = vand.u32 2147483647, %v210_v1 }
  0x12   : > { %v212_v3 = vrot.slane %v211_v2, 4 }
  0x14   : > { %v213_v4 = vmax.f32 %v211_v2, %v212_v3 }
  0x15   : > { %v209_v8 = vld [vmem:[%s196_s15] sm:$0x1] }
  0x16   : > { %v214_v5 = vrot.slane %v213_v4, 2 }
  0x18   : > { %v215_v6 = vmax.f32 %v213_v4, %v214_v5 }
  0x1a   : > { %v216_v7 = vrot.slane %v215_v6, 1 }
  0x1c   : > { %v217_v9 = vmax.f32 %v215_v6, %v216_v7 }
  0x1e   : > { %v218_v10 = vmax.f32 %v209_v8, %v217_v9 }
  0x20   : > { %219 = vst [vmem:[%s196_s15] sm:$0x1] %v218_v10 }
  0x27   : > { %v223_v11 = vld [vmem:[%s196_s15] sm:$0x1] }
  0x28   : > { %v224_v12 = vmax.f32 %v223_v11, 1e-05 }
  0x2a   : > { %225 = vst [vmem:[%s196_s15] sm:$0x1] %v224_v12  ;;  %384 = vrcp.f32 %v224_v12  ;;  %v237_v16 = vand.u32 2147483648, %v224_v12  ;;  %v235_v18 = vand.u32 2147483647, %v224_v12  ;;  %vm231_vm1 = vweird.f32 %v224_v12 }
  0x2c   : > { %v238_v20 = vor.u32 1.1754944e-38, %v237_v16  ;;  %vm236_vm3 = vcmp.eq.f32.partialorder %v235_v18, 8.507059e+37 }
  0x30   : > { %v385_v13 = vpop.eup %384 }
  0x31   : > { %v227_v14 = vmul.f32 %v385_v13, %v224_v12  ;;  %vm232_vm0 = vweird.f32 %v385_v13 }
  0x32   : > { %vm233_vm2 = vmor %vm231_vm1, %vm232_vm0 }
  0x33   : > { %v228_v15 = vsub.f32 1.0, %v227_v14 }
  0x35   : > { %v229_v17 = vmul.f32 %v385_v13, %v228_v15 }
  0x37   : > { %v230_v19 = vadd.f32 %v385_v13, %v229_v17 }
  0x39   : > { %v234_v21 = vsel %vm233_vm2, %v385_v13, %v230_v19 }
  0x3a   : > { %v239_v22 = vsel %vm236_vm3, %v238_v20, %v234_v21 }
  0x3b   : > { %241 = vst [vmem:[%s453_s22] sm:$0x1] %v239_v22 }
  0x3c PF: > { %s13_s11 = sadd.s32 1, %s408_s11   ;;  %s469_s9 = smov %s404_s10 }
  0x3d   : > { %p10_p5 = scmp.ge.s32.totalorder %s13_s11, 4   ;;  %s470_s10 = smov %s472_s12 }
  0x3f   :  { %12 = sbr.rel (!%p10_p5) target bundleno = 2 (0x2), region = 74 }

// kernel: act_quant_wrapper_forward.8
= control target key start
LH: loop header
LB: loop body
LE: loop exit
PB: predicated region body
PF: predicated region fallthrough
CT: control target
= control target key end

     0   :  { %v198_v2 = vmov 0   ;;  %s266_s2 = inlined_call_operand.vmem [shape: bf16[128,128], index: 2, kind: input, shape index: {}]   ;;  %s267_s0 = inlined_call_operand.vmem [shape: f32[16,1], index: 0, kind: input, shape index: {}]   ;;  %s268_s1 = inlined_call_operand.vmem [shape: bf16[16,128], index: 1, kind: input, shape index: {}]   ;;  %s269_s3 = inlined_call_operand.vmem [shape: f32[1,128], index: 3, kind: input, shape index: {}]   ;;  %s270_s4 = inlined_call_operand.vmem [shape: f32[16,128], index: 4, kind: output, shape index: {}]  }
   0x1   :  { %v194_v0 = vld [vmem:[%s266_s2 + $0x38] sm:$0xff]  ;;  %v193_v1 = vld [vmem:[%s266_s2 + $0x30] sm:$0xff]  ;;  %196 = vset.pattern.permute.xlu0 %v198_v2  ;;  %v124_v3 = vld [vmem:[%s267_s0] sm:$0xff] }
   0x2   :  { %89 = vmatpush.bf16.msra.mxu0 %v194_v0  ;;  %128 = vperm.xlu0 %196, %v124_v3   ;;  %v192_v4 = vld [vmem:[%s266_s2 + $0x28] sm:$0xff]  ;;  %v191_v6 = vld [vmem:[%s266_s2 + $0x20] sm:$0xff]  ;;  %v190_v7 = vld [vmem:[%s266_s2 + $0x18] sm:$0xff] }
   0x3   :  { %v125_v5 = vld [vmem:[%s267_s0 + $0x8] sm:$0xff]  ;;  %v189_v8 = vld [vmem:[%s266_s2 + $0x10] sm:$0xff]  ;;  %v187_v10 = vld [vmem:[%s266_s2] sm:$0xff] }
   0x4   :  { %v188_v9 = vld [vmem:[%s266_s2 + $0x8] sm:$0xff]  ;;  %v186_v11 = vld [vmem:[%s268_s1] sm:$0xff] }
   0x5   :  { %v197_v13 = vld [vmem:[%s269_s3] ss:$0 sm:$0xff] }
   0x6   :  { %90 = vmatpush.bf16.msra.mxu0 %v193_v1 }
   0xa   :  { %91 = vmatpush.bf16.msra.mxu0 %v192_v4  ;;  %133 = vperm.xlu0 %196, %v125_v5  }
   0xe   :  { %92 = vmatpush.bf16.msra.mxu0 %v191_v6 }
  0x12   :  { %93 = vmatpush.bf16.msra.mxu0 %v190_v7 }
  0x16   :  { %94 = vmatpush.bf16.msra.mxu0 %v189_v8 }
  0x1a   :  { %95 = vmatpush.bf16.msra.mxu0 %v188_v9 }
  0x1e   :  { %96 = vmatpush.bf16.msra.mxu0 %v187_v10 }
  0x21   :  { %97 = vmatmul.bf16.vlgmr.msra.gmra.mxu0 %v186_v11 }
  0x74   :  { %v129_v12 = vpop.permute.xlu0 %128 }
  0x7c   :  { %v134_v18 = vpop.permute.xlu0 %133 }
  0x9e   :  { %v98_v14 = vpop.f32.mrf.mxu0 }
  0x9f   :  { %v136_v15 = vmul.f32 %v129_v12, %v98_v14 }
  0xa1   :  { %v142_v16 = vadd.f32 %v197_v13, %v136_v15 }
  0xa3   :  { %144 = vst [vmem:[%s270_s4] sm:$0xff] %v142_v16 }
  0xa6   :  { %v100_v17 = vpop.f32.mrf.mxu0 }
  0xa7   :  { %v137_v19 = vmul.f32 %v134_v18, %v100_v17 }
  0xa9   :  { %v143_v20 = vadd.f32 %v197_v13, %v137_v19 }
  0xab   :  { %145 = vst [vmem:[%s270_s4 + $0x8] sm:$0xff] %v143_v20 }

// kernel: act_quant_wrapper_forward.10
= control target key start
LH: loop header
LB: loop body
LE: loop exit
PB: predicated region body
PF: predicated region fallthrough
CT: control target
= control target key end

     0   :  { %s529_s12 = smov 0   ;;  %s531_s13 = smov 0   ;;  %s577_s0 = inlined_call_operand.vmem [shape: f32[2,8,128], index: 0, kind: input, shape index: {}]   ;;  %s578_s1 = inlined_call_operand.vmem [shape: f32[2,1,128], index: 1, kind: input, shape index: {}]   ;;  %s579_s2 = inlined_call_operand.vmem [shape: f32[2,8,1], index: 2, kind: output, shape index: {0}]   ;;  %s580_s3 = inlined_call_operand.vmem [shape: f32[2,8,1], index: 3, kind: output, shape index: {1}]  }
   0x1   :  { %s533_s14 = smov 0  }
   0x2 LB: > { %s33_s15 = sadd.s32 1, %s501_s13  ;;  %p446_p0 = scmp.ge.s32.totalorder %s505_s14, 1  ;;  %s505_s14 = sphi %s533_s14, %s14_s14   ;;  %s501_s13 = sphi %s531_s13, %s582_s13   ;;  %s497_s12 = sphi %s529_s12, %s581_s12  }
   0x3   : > { %p35_p1 = scmp.ge.s32.totalorder %s33_s15, 2  ;;  %p185_p2 = scmp.lt.s32.totalorder %s505_s14, 3 }
   0x5   : > { %s584_s15 = smov (%p35_p1, %s33_s15), 0  ;;  %p186_p3 = pnand %p446_p0, %p185_p2 }
   0x6   : > { %p229_p4 = scmp.lt.s32.totalorder (!%p186_p3), %s497_s12, 1 }
   0x7   : > { %189 = sbr.rel (%p186_p3) target bundleno = 168 (0xa8), region = 28 }
   0xc   : > { %s586_s12 = smov (!%p229_p4, %s497_s12), 1  ;;  %vm263_vm0 = vcmask 7168   ;;  %v507_v1 = vmov 0.0   ;;  %v508_v5 = vmov 14.0  }
   0xd   : > { %s447_s16 = sshll.u32 %s586_s12, 3  ;;  %s244_s19 = scalar_lea.vmem %s578_s1, %s586_s12  ;;  %479 = vrcp.f32 %v508_v5 }
   0xe   : > { %s238_s22 = scalar_lea.vmem %s577_s0, %s447_s16  ;;  %s251_s25 = scalar_lea.vmem %s579_s2, %s447_s16  ;;  %v478_v0 = vld [vmem:[%s244_s19] ss:$0 sm:$0xff] }
   0xf   : > { %s559_s28 = scalar_lea.vmem %s580_s3, %s447_s16  ;;  %264 = vst.msk [vmem:[%s251_s25] sm:$0xff] %vm263_vm0, %v507_v1  ;;  %v266_v2 = vld [vmem:[%s238_s22] sm:$0xff] }
  0x10   : > { %265 = vst.msk [vmem:[%s559_s28] sm:$0xff] %vm263_vm0, %v507_v1  ;;  %v271_v3 = vmul.f32 %v478_v0, %v266_v2 }
  0x12   : > { %v272_v4 = vand.u32 2147483647, %v271_v3 }
  0x13   : > { %v480_v6 = vpop.eup %479 }
  0x14   : > { %274 = vmax.xlane.f32.xlu0 %v272_v4  ;;  %v285_v7 = vmul.f32 14.0, %v480_v6  ;;  %vm289_vm1 = vweird.f32 %v480_v6 }
  0x16   : > { %v273_v8 = vld [vmem:[%s251_s25] sm:$0xff]  ;;  %v286_v9 = vsub.f32 1.0, %v285_v7 }
  0x18   : > { %v287_v12 = vmul.f32 %v480_v6, %v286_v9 }
  0x1a   : > { %v288_v13 = vadd.f32 %v480_v6, %v287_v12 }
  0x1c   : > { %v290_v15 = vsel %vm289_vm1, %v480_v6, %v288_v13 }
  0x87   : > { %v275_v10 = vpop.xlane.xlu0 %274 }
  0x88   : > { %v276_v11 = vmax.f32 %v273_v8, %v275_v10 }
  0x8a   : > { %278 = vst.msk [vmem:[%s251_s25] sm:$0xff] %vm263_vm0, %v276_v11 }
  0x91   : > { %v282_v14 = vld [vmem:[%s251_s25] sm:$0xff] }
  0x92   : > { %v283_v16 = vmax.f32 %v282_v14, 1e-05 }
  0x94   : > { %v291_v17 = vmul.f32 %v290_v15, %v283_v16  ;;  %481 = vrcp.f32 %v283_v16  ;;  %v304_v21 = vand.u32 2147483648, %v283_v16  ;;  %v302_v23 = vand.u32 2147483647, %v283_v16 }
  0x95   : > { %vm298_vm3 = vweird.f32 %v283_v16 }
  0x96   : > { %292 = vst.msk [vmem:[%s251_s25] sm:$0xff] %vm263_vm0, %v291_v17  ;;  %v305_v25 = vor.u32 1.1754944e-38, %v304_v21  ;;  %vm303_vm5 = vcmp.eq.f32.partialorder %v302_v23, 8.507059e+37 }
  0x9a   : > { %v482_v18 = vpop.eup %481 }
  0x9b   : > { %v294_v19 = vmul.f32 %v482_v18, %v283_v16  ;;  %vm299_vm2 = vweird.f32 %v482_v18 }
  0x9c   : > { %vm300_vm4 = vmor %vm298_vm3, %vm299_vm2 }
  0x9d   : > { %v295_v20 = vsub.f32 1.0, %v294_v19 }
  0x9f   : > { %v296_v22 = vmul.f32 %v482_v18, %v295_v20 }
  0xa1   : > { %v297_v24 = vadd.f32 %v482_v18, %v296_v22 }
  0xa3   : > { %v301_v26 = vsel %vm300_vm4, %v482_v18, %v297_v24 }
  0xa4   : > { %v306_v27 = vsel %vm303_vm5, %v305_v25, %v301_v26 }
  0xa5   : > { %v307_v28 = vmul.f32 14.0, %v306_v27 }
  0xa7   : > { %308 = vst.msk [vmem:[%s559_s28] sm:$0xff] %vm263_vm0, %v307_v28 }
  0xa8 PF: > { %s14_s14 = sadd.s32 1, %s505_s14   ;;  %s581_s12 = smov %s501_s13 }
  0xa9   : > { %p11_p5 = scmp.ge.s32.totalorder %s14_s14, 4   ;;  %s582_s13 = smov %s584_s15 }
  0xab   :  { %13 = sbr.rel (!%p11_p5) target bundleno = 2 (0x2), region = 81 }

// kernel: act_quant_wrapper_forward.11
= control target key start
LH: loop header
LB: loop body
LE: loop exit
PB: predicated region body
PF: predicated region fallthrough
CT: control target
= control target key end

     0   :  { %10 = vsyncpa [#allocation3], 0  ;;  %s877_s0 = inlined_call_operand.vmem [shape: f32[2,8,128], index: 0, kind: input, shape index: {}]   ;;  %s878_s1 = inlined_call_operand.vmem [shape: f32[2,1,128], index: 1, kind: input, shape index: {}]   ;;  %s879_s2 = inlined_call_operand.vmem [shape: f32[2,1,128], index: 2, kind: input, shape index: {}]   ;;  %s880_s3 = inlined_call_operand.vmem [shape: f32[2,8,1], index: 3, kind: input, shape index: {}]   ;;  %s881_s4 = inlined_call_operand.vmem [shape: f32[2,8,1], index: 4, kind: input, shape index: {}]   ;;  %s882_s5 = inlined_call_operand.hbm [shape: f32[2,8,128], index: 5, kind: output, shape index: {}]  }
   0x1   :  { %12 = vsyncpa [#allocation3 + $0x1], 0  ;;  %s758_s18 = smov 0   ;;  %s760_s19 = smov 0  }
   0x2   :  { %s762_s20 = smov 0   ;;  %s764_s21 = smov 0  }
   0x3   :  { %s766_s22 = smov 0   ;;  %s768_s23 = smov 0  }
   0x4 LB: > { %s565_s24 = sadd.s32 4294967295, %s725_s23   ;;  %s566_s25 = sadd.s32 4294967294, %s725_s23   ;;  %s725_s23 = sphi %s768_s23, %s18_s23   ;;  %s721_s22 = sphi %s766_s22, %s889_s22   ;;  %s717_s21 = sphi %s764_s21, %s888_s21   ;;  %s713_s20 = sphi %s762_s20, %s887_s20   ;;  %s709_s19 = sphi %s760_s19, %s886_s19   ;;  %s705_s18 = sphi %s758_s18, %s885_s18  }
   0x5   : > { %s37_s26 = sadd.s32 1, %s721_s22  ;;  %s190_s27 = sadd.s32 1, %s713_s20 }
   0x6   : > { %p39_p0 = scmp.ge.s32.totalorder %s37_s26, 2  ;;  %p200_p1 = scmp.ne.s32.totalorder %s713_s20, %s709_s19 }
   0x7   : > { %p201_p2 = scmp.eq.s32.totalorder %s565_s24, 1  ;;  %p206_p3 = scmp.ne.s32.totalorder %s709_s19, %s705_s18 }
   0x8   : > { %s891_s26 = smov (%p39_p0, %s37_s26), 0  ;;  %p207_p5 = scmp.eq.s32.totalorder %s566_s25, 1 }
   0x9   : > { %p798_p4 = por %p201_p2, %p200_p1  ;;  %s183_s29 = ssub.s32 %s721_s22, %s891_s26 }
   0xa   : > { %p569_p6 = scmp.ge.s32.totalorder %s725_s23, 1  ;;  %p188_p7 = scmp.eq.s32.totalorder %s183_s29, 0 }
   0xb   : > { %p805_p8 = por %p207_p5, %p206_p3  ;;  %p276_p9 = scmp.lt.s32.totalorder %s725_s23, 3 }
   0xc   : > { %s811_s6 = scalar_select %p188_p7, %s713_s20, %s190_s27  }
   0xd   : > { %p277_p10 = pnand %p569_p6, %p276_p9 }
   0xe   : > { %p335_p11 = scmp.lt.s32.totalorder (!%p277_p10), %s717_s21, 1  ;;  %s577_s12 = sshll.u32 (!%p277_p10), %s717_s21, 3 }
   0xf   : > { %280 = sbr.rel (%p277_p10) target bundleno = 178 (0xb2), region = 40  ;;  %s428_s15 = scalar_lea.hbm (!%p277_p10), %s882_s5, %s577_s12 }
  0x10   : > { %s432_s29 = sshll.u32 (!%p277_p10), %s428_s15, 4  ;;  %s667_s12 = scalar_lea.hbm (!%p277_p10), %s882_s5, 16  ;;  %s433_s29 = int_to_ptr.hbm [resolvable:$true] %s432_s29 }
  0x11   : > { %s661_s9 = sshra.s32 (!%p277_p10), %s433_s29, 4  ;;  %s662_s9 = int_to_ptr.hbm [resolvable:$true] %s661_s9 }
  0x12   : > { %p668_p1 = scmp.lt.s32.totalorder (!%p277_p10), %s662_s9, %s882_s5 }
  0x14   : > { %v727_v0 = vmov 0   ;;  %s815_s7 = scalar_select %p335_p11, %s717_s21, 1 }
  0x15   : > { %644 = vset.pattern.permute.xlu0 %v727_v0 }
  0x16   : > { %s571_s8 = sshll.u32 %s815_s7, 3  ;;  %s350_s11 = scalar_lea.vmem %s878_s1, %s815_s7 }
  0x17   : > { %s370_s14 = scalar_lea.vmem %s881_s4, %s571_s8  ;;  %s363_s17 = scalar_lea.vmem %s880_s3, %s571_s8  ;;  %v645_v3 = vld [vmem:[%s350_s11] ss:$0 sm:$0xff] }
  0x18   : > { %v377_v1 = vld [vmem:[%s370_s14] sm:$0xff]  ;;  %s356_s27 = scalar_lea.vmem %s879_s2, %s815_s7  ;;  %s344_s10 = scalar_lea.vmem %s877_s0, %s571_s8 }
  0x19   : > { %380 = vperm.xlu0 %644, %v377_v1   ;;  %v402_v2 = vld [vmem:[%s363_s17] sm:$0xff]  ;;  %s332_s11 = sand.u32 1, %s709_s19  }
  0x1a   : > { %v371_v4 = vld [vmem:[%s344_s10] sm:$0xff]  ;;  %s570_s8 = sshll.u32 %s332_s11, 3  ;;  %s416_s21 = scalar_lea.sflag [#allocation3], %s332_s11 }
  0x1b   : > { %v376_v5 = vmul.f32 %v645_v3, %v371_v4  ;;  %v646_v26 = vld [vmem:[%s356_s27] ss:$0 sm:$0xff]  ;;  %s334_s24 = scalar_lea.vmem [#allocation2], %s570_s8  ;;  %s663_s10 = scalar_lea.hbm %s662_s9, 8 }
  0x1c   : > { %s430_s25 = sshll.u32 %s334_s24, 4  ;;  %p664_p12 = scmp.ne.s32.totalorder %s662_s9, %s663_s10  ;;  %s431_s25 = int_to_ptr.vmem [resolvable:$true] %s430_s25 }
  0x1d   : > { %p669_p2 = scmp.lt.s32.totalorder %s667_s12, %s663_s10 }
  0x1e   : > { %p665_p13 = pnand %p664_p12, %p798_p4 }
  0x1f   : > { %p670_p3 = por %p669_p2, %p668_p1 }
  0x20   : > { %p666_p0 = pneg %p665_p13 }
  0x21   : > { %405 = vperm.xlu0 %644, %v402_v2  }
  0x22   : > { %p671_p5 = pnand %p670_p3, %p666_p0 }
  0x8b   : > { %v381_v6 = vpop.permute.xlu0 %380 }
  0x8c   : > { %v383_v7 = vmul.f32 %v381_v6, %v376_v5 }
  0x8e   : > { %v574_v8 = vclamps-f32 %v383_v7, 14.0 }
  0x90   : > { %v386_v9 = vand.u32 2147483647, %v574_v8 }
  0x92   : > { %v388_v10 = vshra.s32 %v386_v9, 23 }
  0x93   : > { %v406_v28 = vpop.permute.xlu0 %405 }
  0x94   : > { %v575_v11 = vadd.s32 4294967169, %v388_v10 }
  0x96   : > { %vm390_vm0 = vcmp.gt.s32.totalorder %v575_v11, 1 }
  0x97   : > { %v391_v12 = vsel %vm390_vm0, %v575_v11, 1 }
  0x98   : > { %v395_v13 = vsub.s32 2, %v391_v12  ;;  %v392_v19 = vadd.s32 125, %v391_v12 }
  0x9a   : > { %v396_v14 = vadd.s32 127, %v395_v13  ;;  %v393_v24 = vshll.u32 %v392_v19, 23 }
  0x9c   : > { %v397_v15 = vshll.u32 %v396_v14, 23 }
  0x9e   : > { %v399_v16 = vmul.f32 %v574_v8, %v397_v15 }
  0xa0   : > { %v582_v17 = vcvt.f32.s32 %v399_v16  ;;  %v580_v20 = vand.u32 2147483647, %v399_v16  ;;  %v585_v22 = vand.u32 2147483648, %v399_v16 }
  0xa2   : > { %v583_v18 = vcvt.s32.f32 %v582_v17  ;;  %vm581_vm1 = vcmp.lt.f32.partialorder %v580_v20, 8388608.0 }
  0xa4   : > { %v584_v21 = vand.u32 2147483647, %v583_v18 }
  0xa6   : > { %v586_v23 = vor.u32 %v585_v22, %v584_v21 }
  0xa8   : > { %v587_v25 = vsel %vm581_vm1, %v586_v23, %v399_v16 }
  0xa9   : > { %v401_v27 = vmul.f32 %v587_v25, %v393_v24 }
  0xab   : > { %v408_v29 = vmul.f32 %v406_v28, %v401_v27 }
  0xad   : > { %v413_v30 = vmul.f32 %v646_v26, %v408_v29 }
  0xaf   : > { %414 = vst [vmem:[%s334_s24] sm:$0xff] %v413_v30 }
  0xb0   : > { %674 = shalt.err (!%p671_p5)
}
  0xb1   : > { %588 = dma.vmem_to_hbm [thread:$0]  (%p798_p4), %s431_s25, 128, %s433_s29, %s416_s21  }
  0xb2 PF: > { %p594_p6 = scmp.ge.s32.totalorder %s725_s23, 2  ;;  %s444_s11 = sand.u32 1, %s705_s18  }
  0xb3   : > { %s445_s14 = scalar_lea.sflag [#allocation3], %s444_s11 }
  0xb4   : > { %p591_p7 = pnand %p594_p6, %p805_p8 }
  0xb6   : > { %p592_p9 = pneg %p591_p7 }
  0xb8   : > { %700 = dma.done.wait (%p592_p9), %s445_s14, 128  }
  0xb9   : > { %702 = vsyncadd (%p592_p9), %s445_s14, 4294967168  ;;  %s18_s23 = sadd.s32 1, %s725_s23   ;;  %s885_s18 = smov %s709_s19 }
  0xba   : > { %p15_p10 = scmp.ge.s32.totalorder %s18_s23, 4   ;;  %s886_s19 = smov %s713_s20 }
  0xbb   : > { %s887_s20 = smov %s811_s6  ;;  %s888_s21 = smov %s721_s22 }
  0xbc   : > { %s889_s22 = smov %s891_s26  ;;  %17 = sbr.rel (!%p15_p10) target bundleno = 4 (0x4), region = 87 }
  0xc1   :  { %451 = vsyncpa [#allocation3], 1 }
  0xc2   :  { %453 = vsyncpa [#allocation3 + $0x1], 1 }

</bundles_post_ra>
